<compile_context>
chip_gen: v7x
topology: tpu7x:2x2x1
jax: 0.10.0
libtpu: 0.0.40
codegen_flags: <defaults>
</compile_context>

<pallas_src>
import functools
import math

import jax
import jax.numpy as jnp
from jax import lax
from jax.experimental import pallas as pl
from jax.experimental.pallas import tpu as pltpu


def _layernorm(x, gamma, beta, eps=1e-5):
    mean = jnp.mean(x, axis=-1, keepdims=True)
    var = jnp.mean((x - mean) ** 2, axis=-1, keepdims=True)
    return (x - mean) * lax.rsqrt(var + eps) * gamma + beta


def _gelu_exact(x):
    # torch nn.GELU() default = exact erf formulation
    return 0.5 * x * (1.0 + lax.erf(x * (1.0 / math.sqrt(2.0))))


def transformer_block_kernel(
    x_ref,                    # (1, N, C)   f32
    g1_ref, b1_ref,           # (1, C)      f32  layernorm1
    wqkv_ref,                 # (C, 3C)     bf16 (y = x @ W layout)
    wproj_ref, bproj_ref,     # (C, C) bf16, (1, C) f32
    g2_ref, b2_ref,           # (1, C)      f32  layernorm2
    w1_ref, bfc1_ref,         # (C, H) bf16, (1, H) f32
    w2_ref, bfc2_ref,         # (H, C) bf16, (1, C) f32
    o_ref,                    # (1, N, C)   f32
    *, num_heads, head_dim, scale,
):
    x = x_ref[0].astype(jnp.float32)                       # (N, C)
    C = num_heads * head_dim

    # ---------------- Attention branch ----------------
    xn = _layernorm(x, g1_ref[0], b1_ref[0])
    qkv = jnp.dot(xn.astype(jnp.bfloat16), wqkv_ref[...],
                  preferred_element_type=jnp.float32)      # (N, 3C) f32

    def to_heads(offset):
        # (N, C) lanes -> (num_heads, N, head_dim): heads on a leading batch axis.
        return jnp.stack(
            [qkv[:, offset + h * head_dim: offset + (h + 1) * head_dim]
             for h in range(num_heads)], axis=0)

    q = to_heads(0 * C).astype(jnp.bfloat16)               # (H, N, hd)
    k = to_heads(1 * C).astype(jnp.bfloat16)
    v = to_heads(2 * C).astype(jnp.bfloat16)

    # Batched over all heads: a single QK^T and a single PV dot_general.
    s = jnp.einsum("hnd,hmd->hnm", q, k,
                   preferred_element_type=jnp.float32) * scale   # (H, N, N) f32
    s = s - jnp.max(s, axis=-1, keepdims=True)
    p = jnp.exp(s)
    p = p * pl.reciprocal(jnp.sum(p, axis=-1, keepdims=True), approx=True)

    ctx = jnp.einsum("hnm,hmd->hnd", p.astype(jnp.bfloat16), v,
                     preferred_element_type=jnp.float32)         # (H, N, hd) f32

    # Merge heads back to (N, C) for the projection matmul.
    ctx2d = jnp.concatenate([ctx[h] for h in range(num_heads)], axis=-1)

    attn_out = jnp.dot(ctx2d.astype(jnp.bfloat16), wproj_ref[...],
                       preferred_element_type=jnp.float32) + bproj_ref[0]
    x1 = x + attn_out

    # ---------------- MLP branch ----------------
    xn2 = _layernorm(x1, g2_ref[0], b2_ref[0])
    h1 = jnp.dot(xn2.astype(jnp.bfloat16), w1_ref[...],
                 preferred_element_type=jnp.float32) + bfc1_ref[0]
    h1 = _gelu_exact(h1)
    h2 = jnp.dot(h1.astype(jnp.bfloat16), w2_ref[...],
                 preferred_element_type=jnp.float32) + bfc2_ref[0]

    o_ref[0] = (x1 + h2).astype(o_ref.dtype)


def _vmem_limit_bytes(N, C, H, num_heads):
    bf16, f32 = 2, 4
    weights = bf16 * (C * 3 * C + C * C + C * H + H * C) * 2      # double-buffered
    io = f32 * (N * C) * 2 * 2                                    # x + out blocks, x2 buffers
    acts = f32 * (3 * N * C            # qkv
                  + 3 * N * C          # per-head q/k/v stacks
                  + 2 * num_heads * N * N   # scores + probs
                  + N * C              # merged context
                  + N * H              # mlp hidden
                  + 4 * N * C)         # residuals / temporaries
    est = 2 * (weights + io + acts)    # headroom
    return int(min(64 * 1024 * 1024, max(32 * 1024 * 1024, est)))


def transformer_block(x, params, *, num_heads):
    B, N, C = x.shape
    head_dim = C // num_heads
    scale = head_dim ** -0.5
    H = params["w1"].shape[1]

    # Matmul weights in bf16 (MXU-native); norm params and biases stay f32.
    wqkv = params["wqkv"].astype(jnp.bfloat16)
    wproj = params["wproj"].astype(jnp.bfloat16)
    w1 = params["w1"].astype(jnp.bfloat16)
    w2 = params["w2"].astype(jnp.bfloat16)

    kernel = functools.partial(
        transformer_block_kernel,
        num_heads=num_heads, head_dim=head_dim, scale=scale)

    full = lambda shape: pl.BlockSpec(shape, lambda b: tuple(0 for _ in shape))

    # TODO(synk): for very large C/H (e.g. C>=1024, H>=4096) stream w1/w2 in
    # K-tiles (extra "arbitrary" grid axis) or single-buffer the weights
    # instead of holding them fully resident.
    # TODO(synk): for long sequences, add a "parallel" query-tile grid axis with
    # flash-style online softmax so the (H, N, N) score tensor never
    # materializes and both v7x TensorCores get work even at B=1.
    return pl.pallas_call(
        kernel,
        out_shape=jax.ShapeDtypeStruct((B, N, C), x.dtype),
        grid_spec=pltpu.PrefetchScalarGridSpec(
            num_scalar_prefetch=0,
            grid=(B,),
            in_specs=[
                pl.BlockSpec((1, N, C), lambda b: (b, 0, 0)),   # x
                full((1, C)), full((1, C)),                     # ln1 gamma/beta
                full((C, 3 * C)),                               # Wqkv
                full((C, C)), full((1, C)),                     # Wproj, bproj
                full((1, C)), full((1, C)),                     # ln2 gamma/beta
                full((C, H)), full((1, H)),                     # fc1
                full((H, C)), full((1, C)),                     # fc2
            ],
            out_specs=pl.BlockSpec((1, N, C), lambda b: (b, 0, 0)),
        ),
        compiler_params=pltpu.CompilerParams(
            dimension_semantics=("parallel",),
            vmem_limit_bytes=_vmem_limit_bytes(N, C, H, num_heads)),
    )(
        x,
        params["g1"], params["b1"],
        wqkv,
        wproj, params["bproj"],
        params["g2"], params["b2"],
        w1, params["bfc1"],
        w2, params["bfc2"],
    )


def reference_block(x, params, *, num_heads):
    # Pure-JAX f32 reference mirroring the PyTorch forward (dropout = identity).
    B, N, C = x.shape
    hd = C // num_heads
    scale = hd ** -0.5

    def ln(v, g, b):
        m = jnp.mean(v, -1, keepdims=True)
        var = jnp.mean((v - m) ** 2, -1, keepdims=True)
        return (v - m) / jnp.sqrt(var + 1e-5) * g + b

    xn = ln(x, params["g1"][0], params["b1"][0])
    qkv = xn @ params["wqkv"]                       # (B, N, 3C)
    qkv = qkv.reshape(B, N, 3, num_heads, hd).transpose(2, 0, 3, 1, 4)
    q, k, v = qkv[0], qkv[1], qkv[2]                # (B, H, N, hd)
    attn = jnp.einsum("bhnd,bhmd->bhnm", q, k) * scale
    attn = jax.nn.softmax(attn, axis=-1)
    out = jnp.einsum("bhnm,bhmd->bhnd", attn, v)
    out = out.transpose(0, 2, 1, 3).reshape(B, N, C)
    out = out @ params["wproj"] + params["bproj"][0]
    x1 = x + out

    xn2 = ln(x1, params["g2"][0], params["b2"][0])
    h = xn2 @ params["w1"] + params["bfc1"][0]
    h = 0.5 * h * (1.0 + lax.erf(h / jnp.sqrt(2.0)))
    h = h @ params["w2"] + params["bfc2"][0]
    return x1 + h


if __name__ == "__main__":
    # Aligned small shapes: N multiple of 8, C multiple of 128, head_dim = 16.
    B, N, C = 2, 16, 128
    num_heads = 8
    mlp_ratio = 4.0
    H = int(C * mlp_ratio)          # 512

    key = jax.random.PRNGKey(0)
    keys = jax.random.split(key, 8)

    x = jax.random.normal(keys[0], (B, N, C), dtype=jnp.float32)

    # Deterministic synthetic parameters (LayerNorm: ones/zeros like nn.LayerNorm init).
    params = {
        "g1": jnp.ones((1, C), jnp.float32),
        "b1": jnp.zeros((1, C), jnp.float32),
        # weights stored transposed relative to torch (in, out) so kernel does x @ W
        "wqkv": 0.05 * jax.random.normal(keys[1], (C, 3 * C), jnp.float32),
        "wproj": 0.05 * jax.random.normal(keys[2], (C, C), jnp.float32),
        "bproj": 0.01 * jax.random.normal(keys[3], (1, C), jnp.float32),
        "g2": jnp.ones((1, C), jnp.float32),
        "b2": jnp.zeros((1, C), jnp.float32),
        "w1": 0.05 * jax.random.normal(keys[4], (C, H), jnp.float32),
        "bfc1": 0.01 * jax.random.normal(keys[5], (1, H), jnp.float32),
        "w2": 0.05 * jax.random.normal(keys[6], (H, C), jnp.float32),
        "bfc2": 0.01 * jax.random.normal(keys[7], (1, C), jnp.float32),
    }

    out = transformer_block(x, params, num_heads=num_heads)
    out = jax.block_until_ready(out)

    ref = reference_block(x, params, num_heads=num_heads)
    max_err = float(jnp.max(jnp.abs(out - ref)))
    # bf16 matmul operands (f32 accumulation) + approx softmax reciprocal ->
    # tolerance relaxed relative to a pure-f32 reference.
    assert jnp.allclose(out, ref, atol=5e-2, rtol=5e-2), max_err

    print("KERNEL_OK")
</pallas_src>

<mosaic_0001>
module attributes {stable_mosaic.version = 11 : i64} {
  func.func @transformer_block_kernel(%arg0: i32, %arg1: memref<1x16x128xf32, #tpu.memory_space<vmem>>, %arg2: memref<1x128xf32, #tpu.memory_space<vmem>>, %arg3: memref<1x128xf32, #tpu.memory_space<vmem>>, %arg4: memref<128x384xbf16, #tpu.memory_space<vmem>>, %arg5: memref<128x128xbf16, #tpu.memory_space<vmem>>, %arg6: memref<1x128xf32, #tpu.memory_space<vmem>>, %arg7: memref<1x128xf32, #tpu.memory_space<vmem>>, %arg8: memref<1x128xf32, #tpu.memory_space<vmem>>, %arg9: memref<128x512xbf16, #tpu.memory_space<vmem>>, %arg10: memref<1x512xf32, #tpu.memory_space<vmem>>, %arg11: memref<512x128xbf16, #tpu.memory_space<vmem>>, %arg12: memref<1x128xf32, #tpu.memory_space<vmem>>, %arg13: memref<1x16x128xf32, #tpu.memory_space<vmem>>) attributes {dimension_semantics = [#tpu.dimension_semantics<parallel>], iteration_bounds = array<i64: 2>, scalar_prefetch = 0 : i64, scratch_operands = 0 : i64, tpu.core_type = #tpu.core_type<tc>, window_params = [{transform_indices = @transform_0, window_bounds = array<i64: 1, 16, 128>}, {pipeline_mode = #tpu.pipeline_mode<synchronous>, transform_indices = @transform_1, window_bounds = array<i64: 1, 128>}, {pipeline_mode = #tpu.pipeline_mode<synchronous>, transform_indices = @transform_2, window_bounds = array<i64: 1, 128>}, {pipeline_mode = #tpu.pipeline_mode<synchronous>, transform_indices = @transform_3, window_bounds = array<i64: 128, 384>}, {pipeline_mode = #tpu.pipeline_mode<synchronous>, transform_indices = @transform_4, window_bounds = array<i64: 128, 128>}, {pipeline_mode = #tpu.pipeline_mode<synchronous>, transform_indices = @transform_5, window_bounds = array<i64: 1, 128>}, {pipeline_mode = #tpu.pipeline_mode<synchronous>, transform_indices = @transform_6, window_bounds = array<i64: 1, 128>}, {pipeline_mode = #tpu.pipeline_mode<synchronous>, transform_indices = @transform_7, window_bounds = array<i64: 1, 128>}, {pipeline_mode = #tpu.pipeline_mode<synchronous>, transform_indices = @transform_8, window_bounds = array<i64: 128, 512>}, {pipeline_mode = #tpu.pipeline_mode<synchronous>, transform_indices = @transform_9, window_bounds = array<i64: 1, 512>}, {pipeline_mode = #tpu.pipeline_mode<synchronous>, transform_indices = @transform_10, window_bounds = array<i64: 512, 128>}, {pipeline_mode = #tpu.pipeline_mode<synchronous>, transform_indices = @transform_11, window_bounds = array<i64: 1, 128>}, {transform_indices = @transform_12, window_bounds = array<i64: 1, 16, 128>}]} {
    %c0 = arith.constant 0 : index
    %c0_0 = arith.constant 0 : index
    %c0_1 = arith.constant 0 : index
    %0 = vector.load %arg1[%c0, %c0_0, %c0_1] : memref<1x16x128xf32, #tpu.memory_space<vmem>>, vector<1x16x128xf32>
    %1 = vector.shape_cast %0 : vector<1x16x128xf32> to vector<16x128xf32>
    %c0_2 = arith.constant 0 : index
    %c0_3 = arith.constant 0 : index
    %2 = vector.load %arg2[%c0_2, %c0_3] : memref<1x128xf32, #tpu.memory_space<vmem>>, vector<1x128xf32>
    %3 = vector.shape_cast %2 : vector<1x128xf32> to vector<128xf32>
    %c0_4 = arith.constant 0 : index
    %c0_5 = arith.constant 0 : index
    %4 = vector.load %arg3[%c0_4, %c0_5] : memref<1x128xf32, #tpu.memory_space<vmem>>, vector<1x128xf32>
    %5 = vector.shape_cast %4 : vector<1x128xf32> to vector<128xf32>
    %cst = arith.constant dense<0.000000e+00> : vector<16xf32>
    %6 = vector.multi_reduction <add>, %1, %cst [1] : vector<16x128xf32> to vector<16xf32>
    %7 = vector.shape_cast %6 : vector<16xf32> to vector<16x1xf32>
    %cst_6 = arith.constant 1.280000e+02 : f32
    %8 = vector.broadcast %cst_6 : f32 to vector<16x1xf32>
    %9 = arith.divf %7, %8 : vector<16x1xf32>
    %10 = vector.broadcast %9 : vector<16x1xf32> to vector<16x128xf32>
    %11 = arith.subf %1, %10 : vector<16x128xf32>
    %12 = arith.mulf %11, %11 : vector<16x128xf32>
    %cst_7 = arith.constant dense<0.000000e+00> : vector<16xf32>
    %13 = vector.multi_reduction <add>, %12, %cst_7 [1] : vector<16x128xf32> to vector<16xf32>
    %14 = vector.shape_cast %13 : vector<16xf32> to vector<16x1xf32>
    %cst_8 = arith.constant 1.280000e+02 : f32
    %15 = vector.broadcast %cst_8 : f32 to vector<16x1xf32>
    %16 = arith.divf %14, %15 : vector<16x1xf32>
    %17 = vector.broadcast %9 : vector<16x1xf32> to vector<16x128xf32>
    %18 = arith.subf %1, %17 : vector<16x128xf32>
    %cst_9 = arith.constant 9.99999974E-6 : f32
    %19 = vector.broadcast %cst_9 : f32 to vector<16x1xf32>
    %20 = arith.addf %16, %19 : vector<16x1xf32>
    %21 = math.rsqrt %20 : vector<16x1xf32>
    %22 = vector.broadcast %21 : vector<16x1xf32> to vector<16x128xf32>
    %23 = arith.mulf %18, %22 : vector<16x128xf32>
    %24 = vector.shape_cast %3 : vector<128xf32> to vector<1x128xf32>
    %25 = vector.broadcast %24 : vector<1x128xf32> to vector<16x128xf32>
    %26 = arith.mulf %23, %25 : vector<16x128xf32>
    %27 = vector.shape_cast %5 : vector<128xf32> to vector<1x128xf32>
    %28 = vector.broadcast %27 : vector<1x128xf32> to vector<16x128xf32>
    %29 = arith.addf %26, %28 : vector<16x128xf32>
    %30 = arith.truncf %29 : vector<16x128xf32> to vector<16x128xbf16>
    %c0_10 = arith.constant 0 : index
    %c0_11 = arith.constant 0 : index
    %31 = vector.load %arg4[%c0_10, %c0_11] : memref<128x384xbf16, #tpu.memory_space<vmem>>, vector<128x384xbf16>
    %cst_12 = arith.constant dense<0.000000e+00> : vector<16x384xf32>
    %32 = tpu.matmul %30, %31, %cst_12 {dimension_numbers = #tpu.dot_dimension_numbers<[1], [0], [0], [1], [0, 0, 1, 1], [], []>} : vector<16x128xbf16>, vector<128x384xbf16>, vector<16x384xf32> -> vector<16x384xf32>
    %33 = vector.extract_strided_slice %32 {offsets = [0, 0], sizes = [16, 16], strides = [1, 1]} : vector<16x384xf32> to vector<16x16xf32>
    %34 = vector.extract_strided_slice %32 {offsets = [0, 16], sizes = [16, 16], strides = [1, 1]} : vector<16x384xf32> to vector<16x16xf32>
    %35 = vector.extract_strided_slice %32 {offsets = [0, 32], sizes = [16, 16], strides = [1, 1]} : vector<16x384xf32> to vector<16x16xf32>
    %36 = vector.extract_strided_slice %32 {offsets = [0, 48], sizes = [16, 16], strides = [1, 1]} : vector<16x384xf32> to vector<16x16xf32>
    %37 = vector.extract_strided_slice %32 {offsets = [0, 64], sizes = [16, 16], strides = [1, 1]} : vector<16x384xf32> to vector<16x16xf32>
    %38 = vector.extract_strided_slice %32 {offsets = [0, 80], sizes = [16, 16], strides = [1, 1]} : vector<16x384xf32> to vector<16x16xf32>
    %39 = vector.extract_strided_slice %32 {offsets = [0, 96], sizes = [16, 16], strides = [1, 1]} : vector<16x384xf32> to vector<16x16xf32>
    %40 = vector.extract_strided_slice %32 {offsets = [0, 112], sizes = [16, 16], strides = [1, 1]} : vector<16x384xf32> to vector<16x16xf32>
    %41 = vector.shape_cast %33 : vector<16x16xf32> to vector<1x16x16xf32>
    %42 = vector.shape_cast %34 : vector<16x16xf32> to vector<1x16x16xf32>
    %43 = vector.shape_cast %35 : vector<16x16xf32> to vector<1x16x16xf32>
    %44 = vector.shape_cast %36 : vector<16x16xf32> to vector<1x16x16xf32>
    %45 = vector.shape_cast %37 : vector<16x16xf32> to vector<1x16x16xf32>
    %46 = vector.shape_cast %38 : vector<16x16xf32> to vector<1x16x16xf32>
    %47 = vector.shape_cast %39 : vector<16x16xf32> to vector<1x16x16xf32>
    %48 = vector.shape_cast %40 : vector<16x16xf32> to vector<1x16x16xf32>
    %49 = tpu.concatenate %41, %42, %43, %44, %45, %46, %47, %48 in 0 : vector<1x16x16xf32>, vector<1x16x16xf32>, vector<1x16x16xf32>, vector<1x16x16xf32>, vector<1x16x16xf32>, vector<1x16x16xf32>, vector<1x16x16xf32>, vector<1x16x16xf32> -> vector<8x16x16xf32>
    %50 = arith.truncf %49 : vector<8x16x16xf32> to vector<8x16x16xbf16>
    %51 = vector.extract_strided_slice %32 {offsets = [0, 128], sizes = [16, 16], strides = [1, 1]} : vector<16x384xf32> to vector<16x16xf32>
    %52 = vector.extract_strided_slice %32 {offsets = [0, 144], sizes = [16, 16], strides = [1, 1]} : vector<16x384xf32> to vector<16x16xf32>
    %53 = vector.extract_strided_slice %32 {offsets = [0, 160], sizes = [16, 16], strides = [1, 1]} : vector<16x384xf32> to vector<16x16xf32>
    %54 = vector.extract_strided_slice %32 {offsets = [0, 176], sizes = [16, 16], strides = [1, 1]} : vector<16x384xf32> to vector<16x16xf32>
    %55 = vector.extract_strided_slice %32 {offsets = [0, 192], sizes = [16, 16], strides = [1, 1]} : vector<16x384xf32> to vector<16x16xf32>
    %56 = vector.extract_strided_slice %32 {offsets = [0, 208], sizes = [16, 16], strides = [1, 1]} : vector<16x384xf32> to vector<16x16xf32>
    %57 = vector.extract_strided_slice %32 {offsets = [0, 224], sizes = [16, 16], strides = [1, 1]} : vector<16x384xf32> to vector<16x16xf32>
    %58 = vector.extract_strided_slice %32 {offsets = [0, 240], sizes = [16, 16], strides = [1, 1]} : vector<16x384xf32> to vector<16x16xf32>
    %59 = vector.shape_cast %51 : vector<16x16xf32> to vector<1x16x16xf32>
    %60 = vector.shape_cast %52 : vector<16x16xf32> to vector<1x16x16xf32>
    %61 = vector.shape_cast %53 : vector<16x16xf32> to vector<1x16x16xf32>
    %62 = vector.shape_cast %54 : vector<16x16xf32> to vector<1x16x16xf32>
    %63 = vector.shape_cast %55 : vector<16x16xf32> to vector<1x16x16xf32>
    %64 = vector.shape_cast %56 : vector<16x16xf32> to vector<1x16x16xf32>
    %65 = vector.shape_cast %57 : vector<16x16xf32> to vector<1x16x16xf32>
    %66 = vector.shape_cast %58 : vector<16x16xf32> to vector<1x16x16xf32>
    %67 = tpu.concatenate %59, %60, %61, %62, %63, %64, %65, %66 in 0 : vector<1x16x16xf32>, vector<1x16x16xf32>, vector<1x16x16xf32>, vector<1x16x16xf32>, vector<1x16x16xf32>, vector<1x16x16xf32>, vector<1x16x16xf32>, vector<1x16x16xf32> -> vector<8x16x16xf32>
    %68 = arith.truncf %67 : vector<8x16x16xf32> to vector<8x16x16xbf16>
    %69 = vector.extract_strided_slice %32 {offsets = [0, 256], sizes = [16, 16], strides = [1, 1]} : vector<16x384xf32> to vector<16x16xf32>
    %70 = vector.extract_strided_slice %32 {offsets = [0, 272], sizes = [16, 16], strides = [1, 1]} : vector<16x384xf32> to vector<16x16xf32>
    %71 = vector.extract_strided_slice %32 {offsets = [0, 288], sizes = [16, 16], strides = [1, 1]} : vector<16x384xf32> to vector<16x16xf32>
    %72 = vector.extract_strided_slice %32 {offsets = [0, 304], sizes = [16, 16], strides = [1, 1]} : vector<16x384xf32> to vector<16x16xf32>
    %73 = vector.extract_strided_slice %32 {offsets = [0, 320], sizes = [16, 16], strides = [1, 1]} : vector<16x384xf32> to vector<16x16xf32>
    %74 = vector.extract_strided_slice %32 {offsets = [0, 336], sizes = [16, 16], strides = [1, 1]} : vector<16x384xf32> to vector<16x16xf32>
    %75 = vector.extract_strided_slice %32 {offsets = [0, 352], sizes = [16, 16], strides = [1, 1]} : vector<16x384xf32> to vector<16x16xf32>
    %76 = vector.extract_strided_slice %32 {offsets = [0, 368], sizes = [16, 16], strides = [1, 1]} : vector<16x384xf32> to vector<16x16xf32>
    %77 = vector.shape_cast %69 : vector<16x16xf32> to vector<1x16x16xf32>
    %78 = vector.shape_cast %70 : vector<16x16xf32> to vector<1x16x16xf32>
    %79 = vector.shape_cast %71 : vector<16x16xf32> to vector<1x16x16xf32>
    %80 = vector.shape_cast %72 : vector<16x16xf32> to vector<1x16x16xf32>
    %81 = vector.shape_cast %73 : vector<16x16xf32> to vector<1x16x16xf32>
    %82 = vector.shape_cast %74 : vector<16x16xf32> to vector<1x16x16xf32>
    %83 = vector.shape_cast %75 : vector<16x16xf32> to vector<1x16x16xf32>
    %84 = vector.shape_cast %76 : vector<16x16xf32> to vector<1x16x16xf32>
    %85 = tpu.concatenate %77, %78, %79, %80, %81, %82, %83, %84 in 0 : vector<1x16x16xf32>, vector<1x16x16xf32>, vector<1x16x16xf32>, vector<1x16x16xf32>, vector<1x16x16xf32>, vector<1x16x16xf32>, vector<1x16x16xf32>, vector<1x16x16xf32> -> vector<8x16x16xf32>
    %86 = arith.truncf %85 : vector<8x16x16xf32> to vector<8x16x16xbf16>
    "tpu.trace_start"() <{level = 10 : i32, message = "hnd,hmd->hnm"}> : () -> ()
    %cst_13 = arith.constant dense<0.000000e+00> : vector<8x16x16xf32>
    %87 = tpu.matmul %50, %68, %cst_13 {dimension_numbers = #tpu.dot_dimension_numbers<[2], [2], [1], [1], [0, 0, 0, 1, 1, 1], [0], [0]>} : vector<8x16x16xbf16>, vector<8x16x16xbf16>, vector<8x16x16xf32> -> vector<8x16x16xf32>
    "tpu.trace_stop"() : () -> ()
    %cst_14 = arith.constant 2.500000e-01 : f32
    %88 = vector.broadcast %cst_14 : f32 to vector<8x16x16xf32>
    %89 = arith.mulf %87, %88 : vector<8x16x16xf32>
    %cst_15 = arith.constant dense<0xFF800000> : vector<8x16xf32>
    %90 = vector.multi_reduction <maximumf>, %89, %cst_15 [2] : vector<8x16x16xf32> to vector<8x16xf32>
    %91 = vector.shape_cast %90 : vector<8x16xf32> to vector<8x16x1xf32>
    %92 = vector.broadcast %91 : vector<8x16x1xf32> to vector<8x16x16xf32>
    %93 = arith.subf %89, %92 : vector<8x16x16xf32>
    %94 = math.exp %93 : vector<8x16x16xf32>
    %cst_16 = arith.constant dense<0.000000e+00> : vector<8x16xf32>
    %95 = vector.multi_reduction <add>, %94, %cst_16 [2] : vector<8x16x16xf32> to vector<8x16xf32>
    %96 = vector.shape_cast %95 : vector<8x16xf32> to vector<8x16x1xf32>
    %97 = tpu.reciprocal %96 {approx = true} : vector<8x16x1xf32> -> vector<8x16x1xf32>
    %98 = vector.broadcast %97 : vector<8x16x1xf32> to vector<8x16x16xf32>
    %99 = arith.mulf %94, %98 : vector<8x16x16xf32>
    %100 = arith.truncf %99 : vector<8x16x16xf32> to vector<8x16x16xbf16>
    "tpu.trace_start"() <{level = 10 : i32, message = "hnm,hmd->hnd"}> : () -> ()
    %cst_17 = arith.constant dense<0.000000e+00> : vector<8x16x16xf32>
    %101 = tpu.matmul %100, %86, %cst_17 {dimension_numbers = #tpu.dot_dimension_numbers<[2], [1], [1], [2], [0, 0, 0, 1, 1, 2], [0], [0]>} : vector<8x16x16xbf16>, vector<8x16x16xbf16>, vector<8x16x16xf32> -> vector<8x16x16xf32>
    "tpu.trace_stop"() : () -> ()
    %102 = vector.extract_strided_slice %101 {offsets = [0, 0, 0], sizes = [1, 16, 16], strides = [1, 1, 1]} : vector<8x16x16xf32> to vector<1x16x16xf32>
    %103 = vector.shape_cast %102 : vector<1x16x16xf32> to vector<16x16xf32>
    %104 = vector.extract_strided_slice %101 {offsets = [1, 0, 0], sizes = [1, 16, 16], strides = [1, 1, 1]} : vector<8x16x16xf32> to vector<1x16x16xf32>
    %105 = vector.shape_cast %104 : vector<1x16x16xf32> to vector<16x16xf32>
    %106 = vector.extract_strided_slice %101 {offsets = [2, 0, 0], sizes = [1, 16, 16], strides = [1, 1, 1]} : vector<8x16x16xf32> to vector<1x16x16xf32>
    %107 = vector.shape_cast %106 : vector<1x16x16xf32> to vector<16x16xf32>
    %108 = vector.extract_strided_slice %101 {offsets = [3, 0, 0], sizes = [1, 16, 16], strides = [1, 1, 1]} : vector<8x16x16xf32> to vector<1x16x16xf32>
    %109 = vector.shape_cast %108 : vector<1x16x16xf32> to vector<16x16xf32>
    %110 = vector.extract_strided_slice %101 {offsets = [4, 0, 0], sizes = [1, 16, 16], strides = [1, 1, 1]} : vector<8x16x16xf32> to vector<1x16x16xf32>
    %111 = vector.shape_cast %110 : vector<1x16x16xf32> to vector<16x16xf32>
    %112 = vector.extract_strided_slice %101 {offsets = [5, 0, 0], sizes = [1, 16, 16], strides = [1, 1, 1]} : vector<8x16x16xf32> to vector<1x16x16xf32>
    %113 = vector.shape_cast %112 : vector<1x16x16xf32> to vector<16x16xf32>
    %114 = vector.extract_strided_slice %101 {offsets = [6, 0, 0], sizes = [1, 16, 16], strides = [1, 1, 1]} : vector<8x16x16xf32> to vector<1x16x16xf32>
    %115 = vector.shape_cast %114 : vector<1x16x16xf32> to vector<16x16xf32>
    %116 = vector.extract_strided_slice %101 {offsets = [7, 0, 0], sizes = [1, 16, 16], strides = [1, 1, 1]} : vector<8x16x16xf32> to vector<1x16x16xf32>
    %117 = vector.shape_cast %116 : vector<1x16x16xf32> to vector<16x16xf32>
    %118 = tpu.concatenate %103, %105, %107, %109, %111, %113, %115, %117 in 1 : vector<16x16xf32>, vector<16x16xf32>, vector<16x16xf32>, vector<16x16xf32>, vector<16x16xf32>, vector<16x16xf32>, vector<16x16xf32>, vector<16x16xf32> -> vector<16x128xf32>
    %119 = arith.truncf %118 : vector<16x128xf32> to vector<16x128xbf16>
    %c0_18 = arith.constant 0 : index
    %c0_19 = arith.constant 0 : index
    %120 = vector.load %arg5[%c0_18, %c0_19] : memref<128x128xbf16, #tpu.memory_space<vmem>>, vector<128x128xbf16>
    %cst_20 = arith.constant dense<0.000000e+00> : vector<16x128xf32>
    %121 = tpu.matmul %119, %120, %cst_20 {dimension_numbers = #tpu.dot_dimension_numbers<[1], [0], [0], [1], [0, 0, 1, 1], [], []>} : vector<16x128xbf16>, vector<128x128xbf16>, vector<16x128xf32> -> vector<16x128xf32>
    %c0_21 = arith.constant 0 : index
    %c0_22 = arith.constant 0 : index
    %122 = vector.load %arg6[%c0_21, %c0_22] : memref<1x128xf32, #tpu.memory_space<vmem>>, vector<1x128xf32>
    %123 = vector.shape_cast %122 : vector<1x128xf32> to vector<128xf32>
    %124 = vector.shape_cast %123 : vector<128xf32> to vector<1x128xf32>
    %125 = vector.broadcast %124 : vector<1x128xf32> to vector<16x128xf32>
    %126 = arith.addf %121, %125 : vector<16x128xf32>
    %127 = arith.addf %1, %126 : vector<16x128xf32>
    %c0_23 = arith.constant 0 : index
    %c0_24 = arith.constant 0 : index
    %128 = vector.load %arg7[%c0_23, %c0_24] : memref<1x128xf32, #tpu.memory_space<vmem>>, vector<1x128xf32>
    %129 = vector.shape_cast %128 : vector<1x128xf32> to vector<128xf32>
    %c0_25 = arith.constant 0 : index
    %c0_26 = arith.constant 0 : index
    %130 = vector.load %arg8[%c0_25, %c0_26] : memref<1x128xf32, #tpu.memory_space<vmem>>, vector<1x128xf32>
    %131 = vector.shape_cast %130 : vector<1x128xf32> to vector<128xf32>
    %cst_27 = arith.constant dense<0.000000e+00> : vector<16xf32>
    %132 = vector.multi_reduction <add>, %127, %cst_27 [1] : vector<16x128xf32> to vector<16xf32>
    %133 = vector.shape_cast %132 : vector<16xf32> to vector<16x1xf32>
    %cst_28 = arith.constant 1.280000e+02 : f32
    %134 = vector.broadcast %cst_28 : f32 to vector<16x1xf32>
    %135 = arith.divf %133, %134 : vector<16x1xf32>
    %136 = vector.broadcast %135 : vector<16x1xf32> to vector<16x128xf32>
    %137 = arith.subf %127, %136 : vector<16x128xf32>
    %138 = arith.mulf %137, %137 : vector<16x128xf32>
    %cst_29 = arith.constant dense<0.000000e+00> : vector<16xf32>
    %139 = vector.multi_reduction <add>, %138, %cst_29 [1] : vector<16x128xf32> to vector<16xf32>
    %140 = vector.shape_cast %139 : vector<16xf32> to vector<16x1xf32>
    %cst_30 = arith.constant 1.280000e+02 : f32
    %141 = vector.broadcast %cst_30 : f32 to vector<16x1xf32>
    %142 = arith.divf %140, %141 : vector<16x1xf32>
    %143 = vector.broadcast %135 : vector<16x1xf32> to vector<16x128xf32>
    %144 = arith.subf %127, %143 : vector<16x128xf32>
    %cst_31 = arith.constant 9.99999974E-6 : f32
    %145 = vector.broadcast %cst_31 : f32 to vector<16x1xf32>
    %146 = arith.addf %142, %145 : vector<16x1xf32>
    %147 = math.rsqrt %146 : vector<16x1xf32>
    %148 = vector.broadcast %147 : vector<16x1xf32> to vector<16x128xf32>
    %149 = arith.mulf %144, %148 : vector<16x128xf32>
    %150 = vector.shape_cast %129 : vector<128xf32> to vector<1x128xf32>
    %151 = vector.broadcast %150 : vector<1x128xf32> to vector<16x128xf32>
    %152 = arith.mulf %149, %151 : vector<16x128xf32>
    %153 = vector.shape_cast %131 : vector<128xf32> to vector<1x128xf32>
    %154 = vector.broadcast %153 : vector<1x128xf32> to vector<16x128xf32>
    %155 = arith.addf %152, %154 : vector<16x128xf32>
    %156 = arith.truncf %155 : vector<16x128xf32> to vector<16x128xbf16>
    %c0_32 = arith.constant 0 : index
    %c0_33 = arith.constant 0 : index
    %157 = vector.load %arg9[%c0_32, %c0_33] : memref<128x512xbf16, #tpu.memory_space<vmem>>, vector<128x512xbf16>
    %cst_34 = arith.constant dense<0.000000e+00> : vector<16x512xf32>
    %158 = tpu.matmul %156, %157, %cst_34 {dimension_numbers = #tpu.dot_dimension_numbers<[1], [0], [0], [1], [0, 0, 1, 1], [], []>} : vector<16x128xbf16>, vector<128x512xbf16>, vector<16x512xf32> -> vector<16x512xf32>
    %c0_35 = arith.constant 0 : index
    %c0_36 = arith.constant 0 : index
    %159 = vector.load %arg10[%c0_35, %c0_36] : memref<1x512xf32, #tpu.memory_space<vmem>>, vector<1x512xf32>
    %160 = vector.shape_cast %159 : vector<1x512xf32> to vector<512xf32>
    %161 = vector.shape_cast %160 : vector<512xf32> to vector<1x512xf32>
    %162 = vector.broadcast %161 : vector<1x512xf32> to vector<16x512xf32>
    %163 = arith.addf %158, %162 : vector<16x512xf32>
    %cst_37 = arith.constant 5.000000e-01 : f32
    %164 = vector.broadcast %cst_37 : f32 to vector<16x512xf32>
    %165 = arith.mulf %164, %163 : vector<16x512xf32>
    %cst_38 = arith.constant 0.707106769 : f32
    %166 = vector.broadcast %cst_38 : f32 to vector<16x512xf32>
    %167 = arith.mulf %163, %166 : vector<16x512xf32>
    %168 = math.erf %167 : vector<16x512xf32>
    %cst_39 = arith.constant 1.000000e+00 : f32
    %169 = vector.broadcast %cst_39 : f32 to vector<16x512xf32>
    %170 = arith.addf %169, %168 : vector<16x512xf32>
    %171 = arith.mulf %165, %170 : vector<16x512xf32>
    %172 = arith.truncf %171 : vector<16x512xf32> to vector<16x512xbf16>
    %c0_40 = arith.constant 0 : index
    %c0_41 = arith.constant 0 : index
    %173 = vector.load %arg11[%c0_40, %c0_41] : memref<512x128xbf16, #tpu.memory_space<vmem>>, vector<512x128xbf16>
    %cst_42 = arith.constant dense<0.000000e+00> : vector<16x128xf32>
    %174 = tpu.matmul %172, %173, %cst_42 {dimension_numbers = #tpu.dot_dimension_numbers<[1], [0], [0], [1], [0, 0, 1, 1], [], []>} : vector<16x512xbf16>, vector<512x128xbf16>, vector<16x128xf32> -> vector<16x128xf32>
    %c0_43 = arith.constant 0 : index
    %c0_44 = arith.constant 0 : index
    %175 = vector.load %arg12[%c0_43, %c0_44] : memref<1x128xf32, #tpu.memory_space<vmem>>, vector<1x128xf32>
    %176 = vector.shape_cast %175 : vector<1x128xf32> to vector<128xf32>
    %177 = vector.shape_cast %176 : vector<128xf32> to vector<1x128xf32>
    %178 = vector.broadcast %177 : vector<1x128xf32> to vector<16x128xf32>
    %179 = arith.addf %174, %178 : vector<16x128xf32>
    %180 = arith.addf %127, %179 : vector<16x128xf32>
    %c0_45 = arith.constant 0 : index
    %c0_46 = arith.constant 0 : index
    %c0_47 = arith.constant 0 : index
    %181 = vector.load %arg13[%c0_45, %c0_46, %c0_47] : memref<1x16x128xf32, #tpu.memory_space<vmem>>, vector<1x16x128xf32>
    %182 = vector.shape_cast %181 : vector<1x16x128xf32> to vector<16x128xf32>
    %183 = vector.shape_cast %180 : vector<16x128xf32> to vector<1x16x128xf32>
    tpu.vector_store %arg13[%c0_45, %c0_46, %c0_47], %183 {strides = array<i32>} : memref<1x16x128xf32, #tpu.memory_space<vmem>>, vector<1x16x128xf32>,
    return
  }
  func.func @transform_0(%arg0: i32) -> (i32, i32, i32) {
    %c0_i32 = arith.constant 0 : i32
    %c0_i32_0 = arith.constant 0 : i32
    %c0_i32_1 = arith.constant 0 : i32
    return %arg0, %c0_i32, %c0_i32_0 : i32, i32, i32
  }
  func.func @transform_1(%arg0: i32) -> (i32, i32) {
    %c0_i32 = arith.constant 0 : i32
    %c0_i32_0 = arith.constant 0 : i32
    %c0_i32_1 = arith.constant 0 : i32
    return %c0_i32, %c0_i32_0 : i32, i32
  }
  func.func @transform_2(%arg0: i32) -> (i32, i32) {
    %c0_i32 = arith.constant 0 : i32
    %c0_i32_0 = arith.constant 0 : i32
    %c0_i32_1 = arith.constant 0 : i32
    return %c0_i32, %c0_i32_0 : i32, i32
  }
  func.func @transform_3(%arg0: i32) -> (i32, i32) {
    %c0_i32 = arith.constant 0 : i32
    %c0_i32_0 = arith.constant 0 : i32
    %c0_i32_1 = arith.constant 0 : i32
    return %c0_i32, %c0_i32_0 : i32, i32
  }
  func.func @transform_4(%arg0: i32) -> (i32, i32) {
    %c0_i32 = arith.constant 0 : i32
    %c0_i32_0 = arith.constant 0 : i32
    %c0_i32_1 = arith.constant 0 : i32
    return %c0_i32, %c0_i32_0 : i32, i32
  }
  func.func @transform_5(%arg0: i32) -> (i32, i32) {
    %c0_i32 = arith.constant 0 : i32
    %c0_i32_0 = arith.constant 0 : i32
    %c0_i32_1 = arith.constant 0 : i32
    return %c0_i32, %c0_i32_0 : i32, i32
  }
  func.func @transform_6(%arg0: i32) -> (i32, i32) {
    %c0_i32 = arith.constant 0 : i32
    %c0_i32_0 = arith.constant 0 : i32
    %c0_i32_1 = arith.constant 0 : i32
    return %c0_i32, %c0_i32_0 : i32, i32
  }
  func.func @transform_7(%arg0: i32) -> (i32, i32) {
    %c0_i32 = arith.constant 0 : i32
    %c0_i32_0 = arith.constant 0 : i32
    %c0_i32_1 = arith.constant 0 : i32
    return %c0_i32, %c0_i32_0 : i32, i32
  }
  func.func @transform_8(%arg0: i32) -> (i32, i32) {
    %c0_i32 = arith.constant 0 : i32
    %c0_i32_0 = arith.constant 0 : i32
    %c0_i32_1 = arith.constant 0 : i32
    return %c0_i32, %c0_i32_0 : i32, i32
  }
  func.func @transform_9(%arg0: i32) -> (i32, i32) {
    %c0_i32 = arith.constant 0 : i32
    %c0_i32_0 = arith.constant 0 : i32
    %c0_i32_1 = arith.constant 0 : i32
    return %c0_i32, %c0_i32_0 : i32, i32
  }
  func.func @transform_10(%arg0: i32) -> (i32, i32) {
    %c0_i32 = arith.constant 0 : i32
    %c0_i32_0 = arith.constant 0 : i32
    %c0_i32_1 = arith.constant 0 : i32
    return %c0_i32, %c0_i32_0 : i32, i32
  }
  func.func @transform_11(%arg0: i32) -> (i32, i32) {
    %c0_i32 = arith.constant 0 : i32
    %c0_i32_0 = arith.constant 0 : i32
    %c0_i32_1 = arith.constant 0 : i32
    return %c0_i32, %c0_i32_0 : i32, i32
  }
  func.func @transform_12(%arg0: i32) -> (i32, i32, i32) {
    %c0_i32 = arith.constant 0 : i32
    %c0_i32_0 = arith.constant 0 : i32
    %c0_i32_1 = arith.constant 0 : i32
    return %arg0, %c0_i32, %c0_i32_0 : i32, i32, i32
  }
}

</mosaic_0001>

<bundles_post_ra>
// kernel: tpu_custom_call.1
= control target key start
LH: loop header
LB: loop body
LE: loop exit
PB: predicated region body
PF: predicated region fallthrough
CT: control target
= control target key end

     0   :  { %s4698_s0 = inlined_call_operand.hbm [shape: f32[2,16,128], index: 0, kind: input, shape index: {}]   ;;  %s4699_s1 = inlined_call_operand.vmem [shape: f32[1,128], index: 1, kind: input, shape index: {}]   ;;  %s4700_s2 = inlined_call_operand.vmem [shape: f32[1,128], index: 2, kind: input, shape index: {}]   ;;  %s4701_s3 = inlined_call_operand.hbm [shape: bf16[128,384], index: 3, kind: input, shape index: {}]   ;;  %s4702_s4 = inlined_call_operand.hbm [shape: bf16[128,128], index: 4, kind: input, shape index: {}]   ;;  %s4703_s5 = inlined_call_operand.vmem [shape: f32[1,128], index: 5, kind: input, shape index: {}]   ;;  %s4704_s6 = inlined_call_operand.vmem [shape: f32[1,128], index: 6, kind: input, shape index: {}]   ;;  %s4705_s7 = inlined_call_operand.vmem [shape: f32[1,128], index: 7, kind: input, shape index: {}]   ;;  %s4706_s8 = inlined_call_operand.hbm [shape: bf16[128,512], index: 8, kind: input, shape index: {}]   ;;  %s4707_s9 = inlined_call_operand.vmem [shape: f32[1,512], index: 9, kind: input, shape index: {}]   ;;  %s4708_s10 = inlined_call_operand.hbm [shape: bf16[512,128], index: 10, kind: input, shape index: {}]   ;;  %s4709_s11 = inlined_call_operand.vmem [shape: f32[1,128], index: 11, kind: input, shape index: {}]   ;;  %s4710_s12 = inlined_call_operand.hbm [shape: f32[2,16,128], index: 12, kind: output, shape index: {}]  }
   0x1   :  { %4717 = sst [smem:[#allocation18_spill]] %s4701_s3 }
   0x2   :  { %4718 = sst [smem:[#allocation19_spill]] %s4707_s9 }
   0x3   :  { %4719 = sst [smem:[#allocation20_spill]] %s4709_s11 }
   0x4   :  { %4720 = sst [smem:[#allocation21_spill]] %s4710_s12 }
   0x5   :  { %17 = vsyncpa [#allocation3], 0 }
   0x6   :  { %19 = vsyncpa [#allocation3 + $0x1], 0 }
   0x7   :  { %20 = vsyncpa [#allocation6], 0 }
   0x8   :  { %21 = vsyncpa [#allocation9], 0 }
   0x9   :  { %22 = vsyncpa [#allocation4], 0 }
   0xa   :  { %24 = vsyncpa [#allocation4 + $0x1], 0  ;;  %s4052_s21 = smov 0   ;;  %s4054_s22 = smov 0  }
   0xb   :  { %s4056_s23 = smov 0   ;;  %s4058_s24 = smov 0  }
   0xc LB: > { %4721 = sst [smem:[#allocation16_spill]] %s3947_s21  ;;  %s4073_s25 = sadd.s32 4294967295, %s3959_s24   ;;  %s3959_s24 = sphi %s4058_s24, %s4748_s24   ;;  %s3955_s23 = sphi %s4056_s23, %s4747_s23   ;;  %s3951_s22 = sphi %s4054_s22, %s4746_s22   ;;  %s3947_s21 = sphi %s4052_s21, %s4745_s21  }
   0xd   : > { %s2914_s26 = sadd.s32 4294967294, %s3959_s24   ;;  %p50_p0 = scmp.ne.s32.totalorder %s3951_s22, %s3947_s21 }
   0xe   : > { %p4712_p1 = scmp.eq.s32.totalorder %s4073_s25, 0  ;;  %p311_p3 = scmp.eq.s32.totalorder %s2914_s26, 1 }
   0xf   : > { %p2915_p5 = scmp.ge.s32.totalorder %s3959_s24, 1  ;;  %p318_p7 = scmp.lt.s32.totalorder %s3959_s24, 3 }
  0x10   : > { %p4082_p4 = por %p4712_p1, %p50_p0  ;;  %p4087_p6 = por %p311_p3, %p50_p0 }
  0x11   : > { %p4092_p8 = pnand %p2915_p5, %p318_p7  ;;  %s3961_s30 = smov [#allocation5]  }
  0x12   : > { %s4722_s27 = scalar_select %p4082_p4, 1, 0 }
  0x13   : > { %s4723_s28 = scalar_select %p4087_p6, 1, 0 }
  0x14   : > { %s4725_s29 = scalar_select %p4092_p8, 1, 0 }
  0x15   : > { %4724 = sst [smem:[#allocation17_spill]] %s4723_s28  ;;  %s336_s13 = sshll.u32 %s3961_s30, 4  ;;  %s4096_s13 = int_to_ptr.vmem [resolvable:$true] %s336_s13 }
  0x16   : > { %p3306_p9 = pneg %p4092_p8  ;;  %s3962_s15 = smov [#allocation8]  }
  0x17   : > { %s371_s16 = sshll.u32 %s3962_s15, 4  ;;  %s4727_s3 = sld [smem:[#allocation18_spill]]  ;;  %s4107_s16 = int_to_ptr.vmem [resolvable:$true] %s371_s16 }
  0x18   : > { %p4103_p11 = pnand %p3306_p9, %p4712_p1 }
  0x1a   : > { %p4117_p13 = pneg %p4103_p11 }
  0x1d   : > { %s3743_s19 = scalar_lea.hbm %s4727_s3, 3072 }
  0x1e   : > { %p3744_p12 = scmp.ne.s32.totalorder %s4727_s3, %s3743_s19  ;;  %p3750_p5 = scmp.lt.u32.totalorder %s3743_s19, %s4727_s3 }
  0x20   : > { %p3746_p0 = pnand %p4117_p13, %p3744_p12 }
  0x22   : > { %p3747_p3 = pneg %p3746_p0 }
  0x24   : > { %p3752_p7 = pnand %p3750_p5, %p3747_p3 }
  0x26   : > { %3755 = shalt.err (!%p3752_p7)
}
  0x27   : > { %s3756_s17 = scalar_lea.vmem %s4096_s13, 3072  ;;  %p3764_p2 = scmp.lt.s32.totalorder %s4096_s13, %s4096_s13 }
  0x28   : > { %p3757_p9 = scmp.ne.s32.totalorder %s4096_s13, %s3756_s17  ;;  %p3765_p6 = scmp.lt.s32.totalorder %s3756_s17, %s3756_s17 }
  0x2a   : > { %p3759_p10 = pnand %p3757_p9, %p4117_p13  ;;  %p3766_p12 = por %p3765_p6, %p3764_p2 }
  0x2c   : > { %p3760_p1 = pneg %p3759_p10 }
  0x2e   : > { %p3767_p0 = pnand %p3766_p12, %p3760_p1 }
  0x30   : > { %3770 = shalt.err (!%p3767_p0)
}
  0x31   : > { %s3963_s18 = smov 192   ;;  %s3964_s28 = smov 12  }
  0x32   : > { %3309 = dma.hbm_to_vmem [thread:$0]  (!%p4103_p11), %s4727_s3, 3072, %s4096_s13, [#allocation6], %s3963_s18, %s3963_s18, %s3964_s28  }
  0x33   : > { %s3771_s21 = scalar_lea.hbm %s4706_s8, 4096 }
  0x34   : > { %p3772_p2 = scmp.ne.s32.totalorder %s4706_s8, %s3771_s21  ;;  %p3778_p10 = scmp.lt.u32.totalorder %s3771_s21, %s4706_s8 }
  0x36   : > { %p3774_p1 = pnand %p3772_p2, %p4117_p13 }
  0x38   : > { %p3775_p6 = pneg %p3774_p1 }
  0x3a   : > { %p3780_p3 = pnand %p3778_p10, %p3775_p6 }
  0x3c   : > { %3783 = shalt.err (!%p3780_p3)
}
  0x3d   : > { %s3784_s13 = scalar_lea.vmem %s4107_s16, 4096  ;;  %p3792_p12 = scmp.lt.s32.totalorder %s4107_s16, %s4107_s16 }
  0x3e   : > { %p3785_p5 = scmp.ne.s32.totalorder %s4107_s16, %s3784_s13  ;;  %p3793_p0 = scmp.lt.s32.totalorder %s3784_s13, %s3784_s13 }
  0x40   : > { %p3787_p7 = pnand %p3785_p5, %p4117_p13  ;;  %p3794_p2 = por %p3793_p0, %p3792_p12 }
  0x42   : > { %p3788_p9 = pneg %p3787_p7 }
  0x44   : > { %p3795_p1 = pnand %p3794_p2, %p3788_p9 }
  0x46   : > { %3798 = shalt.err (!%p3795_p1)
}
  0x47   : > { %s3965_s11 = smov 256   ;;  %s3966_s9 = smov 16  }
  0x48   : > { %3315 = dma.hbm_to_vmem [thread:$0]  (!%p4103_p11), %s4706_s8, 4096, %s4107_s16, [#allocation9], %s3965_s11, %s3965_s11, %s3966_s9  }
  0x49   : > { %s3967_s18 = smov [#allocation7]   ;;  %s3799_s26 = scalar_lea.hbm %s4702_s4, 1024 }
  0x4a   : > { %s349_s28 = sshll.u32 %s3967_s18, 4  ;;  %p3800_p6 = scmp.ne.s32.totalorder %s4702_s4, %s3799_s26  ;;  %s350_s28 = int_to_ptr.vmem [resolvable:$true] %s349_s28 }
  0x4b   : > { %p3806_p5 = scmp.lt.u32.totalorder %s3799_s26, %s4702_s4 }
  0x4c   : > { %p3802_p10 = pnand %p3800_p6, %p4117_p13 }
  0x4e   : > { %p3803_p3 = pneg %p3802_p10 }
  0x50   : > { %p3808_p7 = pnand %p3806_p5, %p3803_p3 }
  0x52   : > { %3811 = shalt.err (!%p3808_p7)
}
  0x53   : > { %s3812_s16 = scalar_lea.vmem %s350_s28, 1024  ;;  %p3820_p2 = scmp.lt.s32.totalorder %s350_s28, %s350_s28 }
  0x54   : > { %p3813_p9 = scmp.ne.s32.totalorder %s350_s28, %s3812_s16  ;;  %p3821_p1 = scmp.lt.s32.totalorder %s3812_s16, %s3812_s16 }
  0x56   : > { %p3815_p12 = pnand %p3813_p9, %p4117_p13  ;;  %p3822_p4 = por %p3821_p1, %p3820_p2 }
  0x58   : > { %p3816_p0 = pneg %p3815_p12 }
  0x5a   : > { %p3823_p8 = pnand %p3822_p4, %p3816_p0 }
  0x5c   : > { %3826 = shalt.err (!%p3823_p8)
}
  0x5d   : > { %s3968_s11 = smov 64   ;;  %s3969_s9 = smov 4  }
  0x5e   : > { %3312 = dma.hbm_to_vmem [thread:$0]  (!%p4103_p11), %s4702_s4, 1024, %s350_s28, [#allocation6], %s3968_s11, %s3968_s11, %s3969_s9  }
  0x5f   : > { %s3970_s21 = smov [#allocation10]   ;;  %s3827_s26 = scalar_lea.hbm %s4708_s10, 4096 }
  0x60   : > { %s387_s18 = sshll.u32 %s3970_s21, 4  ;;  %p3828_p4 = scmp.ne.s32.totalorder %s4708_s10, %s3827_s26  ;;  %s388_s18 = int_to_ptr.vmem [resolvable:$true] %s387_s18 }
  0x61   : > { %p3834_p10 = scmp.lt.u32.totalorder %s3827_s26, %s4708_s10 }
  0x62   : > { %p3830_p8 = pnand %p3828_p4, %p4117_p13 }
  0x64   : > { %p3831_p6 = pneg %p3830_p8 }
  0x66   : > { %p3836_p3 = pnand %p3834_p10, %p3831_p6 }
  0x68   : > { %3839 = shalt.err (!%p3836_p3)
}
  0x69   : > { %s3840_s28 = scalar_lea.vmem %s388_s18, 4096  ;;  %p3848_p12 = scmp.lt.s32.totalorder %s388_s18, %s388_s18 }
  0x6a   : > { %p3841_p5 = scmp.ne.s32.totalorder %s388_s18, %s3840_s28  ;;  %p3849_p0 = scmp.lt.s32.totalorder %s3840_s28, %s3840_s28 }
  0x6c   : > { %p3843_p7 = pnand %p3841_p5, %p4117_p13  ;;  %p3850_p2 = por %p3849_p0, %p3848_p12 }
  0x6e   : > { %p3844_p9 = pneg %p3843_p7 }
  0x70   : > { %p3851_p1 = pnand %p3850_p2, %p3844_p9 }
  0x72   : > { %3854 = shalt.err (!%p3851_p1)
}
  0x73   : > { %3318 = dma.hbm_to_vmem [thread:$0]  (!%p4103_p11), %s4708_s10, 4096, %s388_s18, [#allocation9], %s3968_s11, %s3968_s11, %s3969_s9  }
  0x74   : > { %s4198_s30 = sadd.s32 1, %s3959_s24   ;;  %s37_s21 = sadd.s32 1, %s3955_s23 }
  0x75   : > { %s34_s14 = ssub.s32 %s3959_s24, %s4198_s30  ;;  %p44_p13 = scmp.ne.s32.totalorder %s3955_s23, %s3951_s22 }
  0x76   : > { %p35_p4 = scmp.eq.s32.totalorder %s34_s14, 0  ;;  %p45_p8 = scmp.eq.s32.totalorder %s3959_s24, 0 }
  0x77   : > { %p4729_p6 = scmp.eq.s32.totalorder %s4073_s25, 1  ;;  %p3331_p3 = scmp.lt.s32.totalorder %s3959_s24, 2 }
  0x78   : > { %s4214_s20 = scalar_select %p35_p4, %s3955_s23, %s37_s21  }
  0x79   : > { %p4208_p10 = por %p4729_p6, %p44_p13  ;;  %p46_p5 = por %p45_p8, %p44_p13 }
  0x7a   : > { %s404_s26 = sand.u32 1, %s3955_s23   ;;  %s3054_s11 = sshll.u32 %s3959_s24, 8 }
  0x7b   : > { %s2921_s15 = sshll.u32 %s404_s26, 4  ;;  %s4221_s17 = scalar_lea.hbm %s4698_s0, %s3054_s11 }
  0x7c   : > { %s408_s13 = scalar_lea.vmem [#allocation2], %s2921_s15  ;;  %p4225_p11 = pnand %p3331_p3, %p46_p5 }
  0x7d   : > { %s415_s16 = sshll.u32 %s408_s13, 4  ;;  %s4229_s3 = scalar_lea.sflag [#allocation3], %s404_s26  ;;  %s4223_s16 = int_to_ptr.vmem [resolvable:$true] %s415_s16 }
  0x7e   : > { %s3855_s12 = scalar_lea.hbm %s4221_s17, 256  ;;  %p3857_p9 = pneg %p4225_p11 }
  0x7f   : > { %p3856_p7 = scmp.ne.s32.totalorder %s4221_s17, %s3855_s12  ;;  %s3860_s15 = scalar_lea.hbm %s4698_s0, 512 }
  0x80   : > { %p3861_p2 = scmp.lt.u32.totalorder %s4221_s17, %s4698_s0  ;;  %p3862_p1 = scmp.lt.u32.totalorder %s3860_s15, %s3855_s12 }
  0x81   : > { %p3858_p12 = pnand %p3857_p9, %p3856_p7  ;;  %p3864_p4 = scmp.lt.u32.totalorder %s3855_s12, %s4221_s17 }
  0x82   : > { %p3863_p13 = por %p3862_p1, %p3861_p2 }
  0x83   : > { %p3859_p0 = pneg %p3858_p12 }
  0x84   : > { %p3865_p8 = por %p3864_p4, %p3863_p13 }
  0x86   : > { %p3866_p6 = pnand %p3865_p8, %p3859_p0 }
  0x88   : > { %3869 = shalt.err (!%p3866_p6)
}
  0x89   : > { %s3870_s26 = scalar_lea.vmem %s4223_s16, 256  ;;  %s3971_s18 = smov [#allocation2]  }
  0x8a   : > { %p3871_p3 = scmp.ne.s32.totalorder %s4223_s16, %s3870_s26  ;;  %s3875_s13 = sshll.u32 %s3971_s18, 4  ;;  %s3876_s13 = int_to_ptr.vmem [resolvable:$false] %s3875_s13 }
  0x8b   : > { %s3877_s21 = scalar_lea.vmem %s3876_s13, 512  ;;  %p3878_p12 = scmp.lt.s32.totalorder %s4223_s16, %s3876_s13 }
  0x8c   : > { %p3873_p5 = pnand %p3871_p3, %p3857_p9  ;;  %p3879_p2 = scmp.lt.s32.totalorder %s3877_s21, %s3870_s26 }
  0x8e   : > { %p3874_p7 = pneg %p3873_p5  ;;  %p3880_p1 = por %p3879_p2, %p3878_p12 }
  0x90   : > { %p3881_p13 = pnand %p3880_p1, %p3874_p7 }
  0x92   : > { %3884 = shalt.err (!%p3881_p13)
}
  0x93   : > { %s3972_s12 = smov 128   ;;  %s3973_s14 = smov 8  }
  0x94   : > { %3322 = dma.hbm_to_vmem [thread:$0]  (!%p4225_p11), %s4221_s17, 256, %s4223_s16, %s4229_s3, %s3972_s12, %s3972_s12, %s3973_s14  }
  0x95   : > { %p4732_p9 = scmp.ne.s32.totalorder %s4725_s29, 0 }
  0x96   : > { %s4260_s15 = sand.u32 (!%p4732_p9), 1, %s3951_s22   ;;  %p4733_p0 = scmp.ne.s32.totalorder (!%p4732_p9), %s4722_s27, 0 }
  0x97   : > { %427 = sbr.rel (%p4732_p9) target bundleno = 2795 (0xaeb), region = 68  ;;  %s2925_s11 = sshll.u32 (!%p4732_p9), %s4260_s15, 4 }
  0x98   : > { %s430_s9 = scalar_lea.sflag (!%p4732_p9), [#allocation3], %s4260_s15  ;;  %s4266_s26 = scalar_lea.vmem (!%p4732_p9), [#allocation2], %s2925_s11 }
  0x9e   : > { %3930 = dma.done.wait (%p4733_p0), %s430_s9, 256  }
  0x9f   : > { %3932 = vsyncadd (%p4733_p0), %s430_s9, 4294967040  ;;  %p4734_p11 = scmp.eq.s32.totalorder %s4073_s25, 0 }
  0xa1   : > { %3934 = dma.done.wait (%p4734_p11), [#allocation6], 4096   ;;  %p4735_p4 = pmov %p4734_p11 }
  0xa3   : > { %3936 = vsyncadd (%p4735_p4), [#allocation6], 4294963200  ;;  %p4736_p8 = pmov %p4735_p4 }
  0xa4   : > { %p4737_p6 = pmov %p4735_p4 }
  0xa5   : > { %3938 = dma.done.wait (%p4736_p8), [#allocation9], 8192  }
  0xa6   : > { %3940 = vsyncadd (%p4737_p6), [#allocation9], 4294959104  ;;  %v491_v0 = vld [vmem:[%s4266_s26] sm:$0xff]  ;;  %v492_v1 = vld [vmem:[%s4266_s26 + $0x8] sm:$0xff]  ;;  %v3974_v4 = vmov 0.0   ;;  %v3975_v30 = vmov 0  }
  0xa7   : > { %495 = vadd.xlane.f32.xlu0 %v491_v0  ;;  %v3533_v2 = vld [vmem:[#allocation5 + $0x4] ss:$12 sps:$4 sm:$0xff]   ;;  %v3535_v3 = vld [vmem:[#allocation5] ss:$12 sps:$4 sm:$0xff]   ;;  %3150 = vmatprep.subr.bf16.mxu1 %v3974_v4  ;;  %v3536_v5 = vld [vmem:[#allocation5 + $0x8] ss:$12 sps:$4 sm:$0xff]  }
  0xa8   : > { %v3537_v6 = vld [vmem:[#allocation5 + $0x1c] ss:$12 sps:$4 sm:$0xff]   ;;  %695 = vmatprep.subr.bf16.mxu0 %v3533_v2  ;;  %3151 = vmatpush3.bf16.msra.mxu1 %v3536_v5  ;;  %v3539_v15 = vld [vmem:[#allocation5 + $0x18] ss:$12 sps:$4 sm:$0xff]   ;;  %v3540_v16 = vld [vmem:[#allocation5 + $0x20] ss:$12 sps:$4 sm:$0xff]  }
  0xa9   : > { %696 = vmatpush1.bf16.msra.mxu0 %v3535_v3  ;;  %3152 = vmatprep.subr.bf16.mxu1 %v3974_v4  ;;  %v3541_v17 = vld [vmem:[#allocation5 + $0x34] ss:$12 sps:$4 sm:$0xff]   ;;  %v3543_v18 = vld [vmem:[#allocation5 + $0x30] ss:$12 sps:$4 sm:$0xff]   ;;  %v3544_v19 = vld [vmem:[#allocation5 + $0x38] ss:$12 sps:$4 sm:$0xff]  }
  0xaa   : > { %697 = vmatprep.subr.bf16.mxu0 %v3537_v6  ;;  %v3545_v20 = vld [vmem:[#allocation5 + $0x4c] ss:$12 sps:$4 sm:$0xff]   ;;  %v3547_v21 = vld [vmem:[#allocation5 + $0x48] ss:$12 sps:$4 sm:$0xff]   ;;  %v3548_v22 = vld [vmem:[#allocation5 + $0x50] ss:$12 sps:$4 sm:$0xff]   ;;  %727 = vmatprep.mubr.bf16.mxu0 %v3975_v30 }
  0xab   : > { %497 = vadd.xlane.f32.xlu0 %v492_v1  ;;  %v3549_v23 = vld [vmem:[#allocation5 + $0x64] ss:$12 sps:$4 sm:$0xff]   ;;  %v3551_v24 = vld [vmem:[#allocation5 + $0x60] ss:$12 sps:$4 sm:$0xff]   ;;  %v3552_v25 = vld [vmem:[#allocation5 + $0x68] ss:$12 sps:$4 sm:$0xff]  }
  0xac   : > { %3153 = vmatpush3.bf16.msra.mxu1 %v3540_v16  ;;  %v3553_v26 = vld [vmem:[#allocation5 + $0x7c] ss:$12 sps:$4 sm:$0xff]   ;;  %v3555_v27 = vld [vmem:[#allocation5 + $0x78] ss:$12 sps:$4 sm:$0xff]   ;;  %v3556_v28 = vld [vmem:[#allocation5 + $0x80] ss:$12 sps:$4 sm:$0xff]  }
  0xad   : > { %698 = vmatpush1.bf16.msra.mxu0 %v3539_v15  ;;  %3154 = vmatprep.subr.bf16.mxu1 %v3974_v4  ;;  %v3557_v29 = vld [vmem:[#allocation5 + $0x94] ss:$12 sps:$4 sm:$0xff]   ;;  %vm3976_vm0 = vmmov 0   ;;  %v3559_v31 = vld [vmem:[#allocation5 + $0x90] ss:$12 sps:$4 sm:$0xff]   ;;  %vm935_vm1 = vcmask 130048  }
  0xae   : > { %699 = vmatprep.subr.bf16.mxu0 %v3541_v17  ;;  %3166 = vmatprep.mubr.msk.bf16.mxu1 %vm3976_vm0, %v3974_v4  ;;  %v3560_v32 = vld [vmem:[#allocation5 + $0x98] ss:$12 sps:$4 sm:$0xff]   ;;  %v3563_v34 = vld [vmem:[#allocation5 + $0xa8] ss:$12 sps:$4 sm:$0xff]   ;;  %v3564_v35 = vld [vmem:[#allocation5 + $0xb0] ss:$12 sps:$4 sm:$0xff]  }
  0xaf   : > { %v3561_v33 = vld [vmem:[#allocation5 + $0xac] ss:$12 sps:$4 sm:$0xff]   ;;  %v2931_v44 = vld [vmem:[%s4699_s1] ss:$0 sm:$0xff]  ;;  %s3977_s28 = smov 112   ;;  %s3978_s3 = smov 96  }
  0xb0   : > { %3155 = vmatpush3.bf16.msra.mxu1 %v3544_v19  ;;  %v2932_v48 = vld [vmem:[%s4700_s2] ss:$0 sm:$0xff]  ;;  %s3979_s18 = smov 80   ;;  %s3980_s13 = smov 64   ;;  %vm1922_vm2 = vcmask 261120   ;;  %vm1925_vm3 = vcmask 392192  }
  0xb1   : > { %700 = vmatpush1.bf16.msra.mxu0 %v3543_v18  ;;  %3156 = vmatprep.subr.bf16.mxu1 %v3974_v4  ;;  %s3981_s21 = smov 48   ;;  %s3982_s12 = smov 32   ;;  %vm1928_vm4 = vcmask 523264   ;;  %vm1931_vm5 = vcmask 654336   ;;  %vm1934_vm6 = vcmask 785408   ;;  %vm1937_vm7 = vcmask 916480  }
  0xb2   : > { %701 = vmatprep.subr.bf16.mxu0 %v3545_v20  ;;  %s3983_s14 = smov 16   ;;  %s3055_s27 = sshll.u32 %s4073_s25, 8 }
  0xb3   : > { %s4740_s17 = sld [smem:[#allocation21_spill]]  ;;  %s3984_s25 = smov [#allocation11]  }
  0xb4   : > { %3157 = vmatpush3.bf16.msra.mxu1 %v3548_v22 }
  0xb5   : > { %702 = vmatpush1.bf16.msra.mxu0 %v3547_v21  ;;  %3158 = vmatprep.subr.bf16.mxu1 %v3974_v4 }
  0xb6   : > { %703 = vmatprep.subr.bf16.mxu0 %v3549_v23 }
  0xb8   : > { %3159 = vmatpush3.bf16.msra.mxu1 %v3552_v25 }
  0xb9   : > { %704 = vmatpush1.bf16.msra.mxu0 %v3551_v24  ;;  %3160 = vmatprep.subr.bf16.mxu1 %v3974_v4  ;;  %s4653_s16 = scalar_lea.hbm %s4740_s17, %s3055_s27 }
  0xba   : > { %705 = vmatprep.subr.bf16.mxu0 %v3553_v26 }
  0xbc   : > { %3161 = vmatpush3.bf16.msra.mxu1 %v3556_v28 }
  0xbd   : > { %706 = vmatpush1.bf16.msra.mxu0 %v3555_v27  ;;  %3162 = vmatprep.subr.bf16.mxu1 %v3974_v4 }
  0xbe   : > { %707 = vmatprep.subr.bf16.mxu0 %v3557_v29 }
  0xc0   : > { %3163 = vmatpush3.bf16.msra.mxu1 %v3560_v32 }
  0xc1   : > { %708 = vmatpush1.bf16.msra.mxu0 %v3559_v31  ;;  %3164 = vmatprep.subr.bf16.mxu1 %v3974_v4 }
  0xc2   : > { %709 = vmatprep.subr.bf16.mxu0 %v3561_v33 }
  0xc4   : > { %3165 = vmatpush3.bf16.msra.mxu1 %v3564_v35 }
  0xc5   : > { %710 = vmatpush1.bf16.msra.mxu0 %v3563_v34  ;;  %3170 = vmatprep.subr.bf16.mxu1 %v3974_v4 }
  0xc6   : > { %3194 = vmatprep.subr.bf16.mxu0 %v3974_v4 }
 0x134   : > { %v496_v7 = vpop.xlane.xlu0 %495 }
 0x135   : > { %v500_v8 = vmul.f32 0.0078125, %v496_v7 }
 0x137   : > { %v4284_v9 = vsub.f32 %v491_v0, %v500_v8 }
 0x138   : > { %v498_v10 = vpop.xlane.xlu0 %497 }
 0x139   : > { %v501_v11 = vmul.f32 0.0078125, %v498_v10  ;;  %v504_v12 = vmul.f32 %v4284_v9, %v4284_v9 }
 0x13b   : > { %v4288_v13 = vsub.f32 %v492_v1, %v501_v11  ;;  %506 = vadd.xlane.f32.xlu1 %v504_v12 }
 0x13d   : > { %v505_v14 = vmul.f32 %v4288_v13, %v4288_v13 }
 0x13f   : > { %508 = vadd.xlane.f32.xlu1 %v505_v14 }
 0x1c8   : > { %v507_v36 = vpop.xlane.xlu1 %506 }
 0x1c9   : > { %v510_v37 = vmul.f32 0.0078125, %v507_v36 }
 0x1cb   : > { %v512_v38 = vadd.f32 1e-05, %v510_v37 }
 0x1cc   : > { %v509_v39 = vpop.xlane.xlu1 %508 }
 0x1cd   : > { %3653 = vrsqrt.f32 %v512_v38  ;;  %v511_v40 = vmul.f32 0.0078125, %v509_v39 }
 0x1cf   : > { %v513_v41 = vadd.f32 1e-05, %v511_v40 }
 0x1d1   : > { %3655 = vrsqrt.f32 %v513_v41 }
 0x1d7   : > { %v3654_v42 = vpop.eup %3653 }
 0x1d8   : > { %v516_v43 = vmul.f32 %v3654_v42, %v4284_v9 }
 0x1da   : > { %v524_v47 = vmul.f32 %v2931_v44, %v516_v43 }
 0x1db   : > { %v3656_v45 = vpop.eup %3655 }
 0x1dc   : > { %v517_v46 = vmul.f32 %v3656_v45, %v4288_v13  ;;  %v532_v50 = vadd.f32 %v2932_v48, %v524_v47 }
 0x1de   : > { %v525_v49 = vmul.f32 %v2931_v44, %v517_v46 }
 0x1e0   : > { %v533_v51 = vadd.f32 %v2932_v48, %v525_v49 }
 0x1e2   : > { %v534_v52 = vpack.c.bf16 %v533_v51, %v532_v50 }
 0x1e4   : > { %728 = vmatmul.mubr.bf16.vlgmr.msra.gmra.mrb[0].mxu0 %v534_v52  ;;  %3167 = vmatmul.mubr.bf16.vlgmr.msra.gmra.mrb[0].mxu1 %v534_v52 }
 0x1e5   : > { %3172 = vmatprep.mubr.msk.bf16.mxu1 %vm3976_vm0, %v3974_v4  ;;  %3196 = vmatprep.mubr.msk.bf16.mxu0 %vm3976_vm0, %v3974_v4 }
 0x2b7   : > { %v729_v53 = vpop.f32.mrb[0].mxu0  ;;  %v4315_v54 = vpop.f32.mrb[0].mxu1 }
 0x2b8   : > { %v731_v55 = vpop.f32.mrb[1].mxu0  ;;  %v3168_v56 = vpop.f32.mrb[1].mxu1 }
 0x2b9   : > { %v733_v57 = vpop.f32.mrb[2].mxu0  ;;  %v4317_v58 = vpop.f32.mrb[2].mxu1 }
 0x2ba   : > { %v735_v59 = vpop.f32.mrb[3].mxu0  ;;  %v3169_v60 = vpop.f32.mrb[3].mxu1  ;;  %v3398_v61 = vpack.i.bf16 %v733_v57, %v729_v53  ;;  %v823_v62 = vpack.c.bf16 %v733_v57, %v729_v53  ;;  %v927_v2 = vpack.c.bf16 %v4317_v58, %v4315_v54  ;;  %v4326_v3 = vpack.i.bf16 %v4317_v58, %v4315_v54 }
 0x2bb   : > { %v3393_v63 = vpack.i.bf16 %v735_v59, %v731_v55  ;;  %v875_v0 = vpack.c.bf16 %v735_v59, %v731_v55 }
 0x2bc   : > { %3399 = vrot.lane.b32.xlu1 %v3398_v61, %s3977_s28 }
 0x2bd   : > { %3394 = vrot.lane.b32.xlu0 %v3393_v63, %s3977_s28  ;;  %v940_v1 = vsel %vm935_vm1, %v875_v0, 0 }
 0x2be   : > { %3171 = vmatpush3.bf16.xpose.msra.mxu1 %v940_v1 }
 0x2bf   : > { %3176 = vmatprep.subr.bf16.mxu1 %v3974_v4 }
 0x2c0   : > { %3404 = vrot.lane.b32.xlu1 %v3393_v63, %s3978_s3 }
 0x2c1   : > { %3414 = vrot.lane.b32.xlu0 %v3393_v63, %s3979_s18 }
 0x2c4   : > { %3409 = vrot.lane.b32.xlu1 %v3398_v61, %s3978_s3 }
 0x2c5   : > { %3419 = vrot.lane.b32.xlu0 %v3398_v61, %s3979_s18  ;;  %3173 = vmatmul.mubr.msk.bf16.vlgmr.msra.gmra.mrb[4].mxu1 %vm935_vm1, %v823_v62 }
 0x2c6   : > { %3178 = vmatprep.mubr.msk.bf16.mxu1 %vm3976_vm0, %v3974_v4 }
 0x2c8   : > { %3434 = vrot.lane.b32.xlu1 %v3393_v63, %s3980_s13 }
 0x2c9   : > { %3424 = vrot.lane.b32.xlu0 %v3398_v61, %s3980_s13 }
 0x2cc   : > { %3439 = vrot.lane.b32.xlu1 %v3393_v63, %s3981_s21 }
 0x2cd   : > { %3429 = vrot.lane.b32.xlu0 %v3398_v61, %s3981_s21 }
 0x2d0   : > { %3444 = vrot.lane.b32.xlu1 %v3393_v63, %s3982_s12 }
 0x2d1   : > { %3454 = vrot.lane.b32.xlu0 %v3398_v61, %s3982_s12 }
 0x2d4   : > { %3449 = vrot.lane.b32.xlu1 %v3393_v63, %s3983_s14 }
 0x2d8   : > { %3459 = vrot.lane.b32.xlu1 %v3398_v61, %s3983_s14 }
 0x32e   : > { %v3400_v5 = vpop.permute.xlu1 %3399 }
 0x32f   : > { %v3395_v6 = vpop.permute.xlu0 %3394  ;;  %v3402_v15 = vunpack.i.h.bf16 %v3400_v5  ;;  %v3401_v16 = vunpack.i.l.bf16 %v3400_v5 }
 0x330   : > { %v3397_v7 = vunpack.i.h.bf16 %v3395_v6  ;;  %v3396_v8 = vunpack.i.l.bf16 %v3395_v6 }
 0x331   : > { %v824_v20 = vpack.c.bf16 %v3402_v15, %v3401_v16 }
 0x332   : > { %v876_v9 = vpack.c.bf16 %v3397_v7, %v3396_v8  ;;  %v3405_v10 = vpop.permute.xlu1 %3404 }
 0x333   : > { %v3415_v11 = vpop.permute.xlu0 %3414  ;;  %v3407_v12 = vunpack.i.h.bf16 %v3405_v10  ;;  %v3406_v13 = vunpack.i.l.bf16 %v3405_v10 }
 0x334   : > { %v987_v14 = vsel %vm935_vm1, %v876_v9, 0  ;;  %v3417_v25 = vunpack.i.h.bf16 %v3415_v11  ;;  %v3416_v26 = vunpack.i.l.bf16 %v3415_v11 }
 0x335   : > { %3177 = vmatpush3.bf16.xpose.msra.mxu1 %v987_v14  ;;  %v877_v19 = vpack.c.bf16 %v3407_v12, %v3406_v13 }
 0x336   : > { %v3410_v17 = vpop.permute.xlu1 %3409  ;;  %3182 = vmatprep.subr.bf16.mxu1 %v3974_v4  ;;  %v878_v34 = vpack.c.bf16 %v3417_v25, %v3416_v26 }
 0x337   : > { %v3420_v18 = vpop.permute.xlu0 %3419  ;;  %v1034_v27 = vsel %vm935_vm1, %v877_v19, 0  ;;  %v3412_v29 = vunpack.i.h.bf16 %v3410_v17  ;;  %v3411_v31 = vunpack.i.l.bf16 %v3410_v17 }
 0x338   : > { %v1081_v44 = vsel %vm935_vm1, %v878_v34, 0  ;;  %v3422_v47 = vunpack.i.h.bf16 %v3420_v18  ;;  %v3421_v48 = vunpack.i.l.bf16 %v3420_v18 }
 0x339   : > { %v825_v38 = vpack.c.bf16 %v3412_v29, %v3411_v31 }
 0x33a   : > { %v3435_v21 = vpop.permute.xlu1 %3434  ;;  %v826_v56 = vpack.c.bf16 %v3422_v47, %v3421_v48 }
 0x33b   : > { %v3437_v22 = vunpack.i.h.bf16 %v3435_v21  ;;  %v3436_v23 = vunpack.i.l.bf16 %v3435_v21  ;;  %v3425_v24 = vpop.permute.xlu0 %3424 }
 0x33c   : > { %3179 = vmatmul.mubr.msk.bf16.vlgmr.msra.gmra.mrb[8].mxu1 %vm935_vm1, %v824_v20  ;;  %v3427_v36 = vunpack.i.h.bf16 %v3425_v24  ;;  %v3426_v37 = vunpack.i.l.bf16 %v3425_v24 }
 0x33d   : > { %v879_v28 = vpack.c.bf16 %v3437_v22, %v3436_v23  ;;  %3183 = vmatpush3.bf16.xpose.msra.mxu1 %v1034_v27  ;;  %3184 = vmatprep.mubr.msk.bf16.mxu1 %vm3976_vm0, %v3974_v4 }
 0x33e   : > { %v3440_v32 = vpop.permute.xlu1 %3439  ;;  %3188 = vmatprep.subr.bf16.mxu1 %v3974_v4  ;;  %v827_v45 = vpack.c.bf16 %v3427_v36, %v3426_v37 }
 0x33f   : > { %v1128_v33 = vsel %vm935_vm1, %v879_v28, 0  ;;  %v3430_v35 = vpop.permute.xlu0 %3429  ;;  %v3442_v42 = vunpack.i.h.bf16 %v3440_v32  ;;  %v3441_v43 = vunpack.i.l.bf16 %v3440_v32 }
 0x340   : > { %3195 = vmatpush3.bf16.xpose.msra.mxu0 %v1128_v33  ;;  %v3432_v62 = vunpack.i.h.bf16 %v3430_v35  ;;  %v3431_v63 = vunpack.i.l.bf16 %v3430_v35 }
 0x341   : > { %3206 = vmatprep.subr.bf16.mxu0 %v3974_v4  ;;  %v880_v51 = vpack.c.bf16 %v3442_v42, %v3441_v43 }
 0x342   : > { %v3445_v39 = vpop.permute.xlu1 %3444  ;;  %v828_v1 = vpack.c.bf16 %v3432_v62, %v3431_v63 }
 0x343   : > { %v3447_v40 = vunpack.i.h.bf16 %v3445_v39  ;;  %v3446_v41 = vunpack.i.l.bf16 %v3445_v39  ;;  %v3455_v49 = vpop.permute.xlu0 %3454  ;;  %v1175_v60 = vsel %vm935_vm1, %v880_v51, 0 }
 0x344   : > { %3185 = vmatmul.mubr.msk.bf16.vlgmr.msra.gmra.mrb[12].mxu1 %vm935_vm1, %v825_v38  ;;  %v3457_v52 = vunpack.i.h.bf16 %v3455_v49  ;;  %v3456_v53 = vunpack.i.l.bf16 %v3455_v49 }
 0x345   : > { %v881_v46 = vpack.c.bf16 %v3447_v40, %v3446_v41  ;;  %3189 = vmatpush3.bf16.xpose.msra.mxu1 %v1081_v44  ;;  %3190 = vmatprep.mubr.msk.bf16.mxu1 %vm3976_vm0, %v3974_v4 }
 0x346   : > { %3200 = vmatprep.subr.bf16.mxu1 %v3974_v4  ;;  %v3450_v55 = vpop.permute.xlu1 %3449  ;;  %v829_v61 = vpack.c.bf16 %v3457_v52, %v3456_v53 }
 0x347   : > { %3197 = vmatmul.mubr.msk.bf16.vlgmr.msra.gmra.mrb[4].mxu0 %vm935_vm1, %v827_v45  ;;  %v1222_v50 = vsel %vm935_vm1, %v881_v46, 0  ;;  %v3452_v57 = vunpack.i.h.bf16 %v3450_v55  ;;  %v3451_v59 = vunpack.i.l.bf16 %v3450_v55 }
 0x348   : > { %3207 = vmatpush3.bf16.xpose.msra.mxu0 %v1222_v50  ;;  %3208 = vmatprep.mubr.msk.bf16.mxu0 %vm3976_vm0, %v3974_v4 }
 0x349   : > { %3218 = vmatprep.subr.bf16.mxu0 %v3974_v4  ;;  %v882_v0 = vpack.c.bf16 %v3452_v57, %v3451_v59 }
 0x34a   : > { %v3460_v5 = vpop.permute.xlu1 %3459 }
 0x34b   : > { %v1269_v6 = vsel %vm935_vm1, %v882_v0, 0  ;;  %v3462_v7 = vunpack.i.h.bf16 %v3460_v5  ;;  %v3461_v8 = vunpack.i.l.bf16 %v3460_v5 }
 0x34c   : > { %3191 = vmatmul.mubr.msk.bf16.vlgmr.msra.gmra.mrb[16].mxu1 %vm935_vm1, %v826_v56 }
 0x34d   : > { %3201 = vmatpush3.bf16.xpose.msra.mxu1 %v1175_v60  ;;  %3202 = vmatprep.mubr.msk.bf16.mxu1 %vm3976_vm0, %v3974_v4  ;;  %v830_v54 = vpack.c.bf16 %v3462_v7, %v3461_v8 }
 0x34e   : > { %3212 = vmatprep.subr.bf16.mxu1 %v3974_v4 }
 0x34f   : > { %3209 = vmatmul.mubr.msk.bf16.vlgmr.msra.gmra.mrb[8].mxu0 %vm935_vm1, %v829_v61 }
 0x350   : > { %3219 = vmatpush3.bf16.msra.mxu0 %v927_v2  ;;  %3220 = vmatprep.mubr.msk.bf16.mxu0 %vm3976_vm0, %v3974_v4 }
 0x351   : > { %3230 = vmatprep.subr.bf16.mxu0 %v3974_v4 }
 0x354   : > { %3203 = vmatmul.mubr.msk.bf16.vlgmr.msra.gmra.mrb[20].mxu1 %vm935_vm1, %v828_v1 }
 0x355   : > { %3213 = vmatpush3.bf16.xpose.msra.mxu1 %v1269_v6  ;;  %3214 = vmatprep.mubr.msk.bf16.mxu1 %vm3976_vm0, %v3974_v4 }
 0x356   : > { %3224 = vmatprep.subr.bf16.mxu1 %v3974_v4 }
 0x35c   : > { %3215 = vmatmul.mubr.msk.bf16.vlgmr.msra.gmra.mrb[24].mxu1 %vm935_vm1, %v830_v54 }
 0x35d   : > { %3226 = vmatprep.mubr.msk.bf16.mxu1 %vm3976_vm0, %v3974_v4 }
 0x398   : > { %v976_v58 = vpop.f32.mrb[4].mxu1 }
 0x399   : > { %v4383_v2 = vmul.f32 0.25, %v976_v58  ;;  %v3174_v9 = vpop.f32.mrb[5].mxu1 }
 0x39a   : > { %v979_v10 = vpop.f32.mrb[6].mxu1 }
 0x39b   : > { %v4385_v11 = vmul.f32 0.25, %v979_v10  ;;  %v3175_v12 = vpop.f32.mrb[7].mxu1  ;;  %v1328_v13 = vsel %vm935_vm1, %v4383_v2, -inf }
 0x39c   : > { %1329 = vmax.xlane.f32.xlu0 %v1328_v13 }
 0x39d   : > { %v1331_v14 = vsel %vm935_vm1, %v4385_v11, -inf }
 0x39e   : > { %1332 = vmax.xlane.f32.xlu1 %v1331_v14 }
 0x40f   : > { %v1023_v15 = vpop.f32.mrb[8].mxu1 }
 0x410   : > { %v4391_v16 = vmul.f32 0.25, %v1023_v15  ;;  %v3180_v17 = vpop.f32.mrb[9].mxu1 }
 0x411   : > { %v1026_v18 = vpop.f32.mrb[10].mxu1 }
 0x412   : > { %v3181_v19 = vpop.f32.mrb[11].mxu1  ;;  %v1334_v20 = vsel %vm935_vm1, %v4391_v16, -inf  ;;  %v4397_v29 = vmul.f32 0.25, %v1026_v18 }
 0x413   : > { %1335 = vmax.xlane.f32.xlu0 %v1334_v20 }
 0x414   : > { %v1337_v40 = vsel %vm935_vm1, %v4397_v29, -inf }
 0x417   : > { %v1070_v21 = vpop.f32.mrb[12].mxu1 }
 0x418   : > { %v3186_v22 = vpop.f32.mrb[13].mxu1  ;;  %v4407_v38 = vmul.f32 0.25, %v1070_v21 }
 0x419   : > { %v1073_v23 = vpop.f32.mrb[14].mxu1 }
 0x41a   : > { %v3187_v24 = vpop.f32.mrb[15].mxu1  ;;  %v1164_v25 = vpop.f32.mrb[4].mxu0  ;;  %v4403_v34 = vmul.f32 0.25, %v1073_v23  ;;  %v1340_v49 = vsel %vm935_vm1, %v4407_v38, -inf }
 0x41b   : > { %v4395_v26 = vmul.f32 0.25, %v1164_v25  ;;  %v3198_v27 = vpop.f32.mrb[5].mxu0 }
 0x41c   : > { %v1167_v28 = vpop.f32.mrb[6].mxu0  ;;  %v1343_v44 = vsel %vm935_vm1, %v4403_v34, -inf }
 0x41d   : > { %v4399_v31 = vmul.f32 0.25, %v1167_v28  ;;  %v3199_v32 = vpop.f32.mrb[7].mxu0  ;;  %v1352_v33 = vsel %vm935_vm1, %v4395_v26, -inf }
 0x41e   : > { %1353 = vmax.xlane.f32.xlu0 %v1352_v33 }
 0x41f   : > { %v1117_v35 = vpop.f32.mrb[16].mxu1  ;;  %v1355_v36 = vsel %vm935_vm1, %v4399_v31, -inf }
 0x420   : > { %1356 = vmax.xlane.f32.xlu1 %v1355_v36  ;;  %v3192_v37 = vpop.f32.mrb[17].mxu1  ;;  %v4421_v53 = vmul.f32 0.25, %v1117_v35 }
 0x421   : > { %v1120_v39 = vpop.f32.mrb[18].mxu1 }
 0x422   : > { %v1258_v41 = vpop.f32.mrb[8].mxu0  ;;  %1338 = vmax.xlane.f32.xlu0 %v1337_v40  ;;  %v3193_v42 = vpop.f32.mrb[19].mxu1  ;;  %v1346_v59 = vsel %vm935_vm1, %v4421_v53, -inf  ;;  %v4431_v0 = vmul.f32 0.25, %v1120_v39 }
 0x423   : > { %v3210_v43 = vpop.f32.mrb[9].mxu0  ;;  %v4413_v46 = vmul.f32 0.25, %v1258_v41 }
 0x424   : > { %v1261_v45 = vpop.f32.mrb[10].mxu0  ;;  %1344 = vmax.xlane.f32.xlu1 %v1343_v44  ;;  %v1349_v5 = vsel %vm935_vm1, %v4431_v0, -inf }
 0x425   : > { %v4415_v47 = vmul.f32 0.25, %v1261_v45  ;;  %v3211_v48 = vpop.f32.mrb[11].mxu0  ;;  %v1364_v56 = vsel %vm935_vm1, %v4413_v46, -inf }
 0x426   : > { %1341 = vmax.xlane.f32.xlu0 %v1340_v49 }
 0x427   : > { %v1211_v50 = vpop.f32.mrb[20].mxu1  ;;  %v1367_v51 = vsel %vm935_vm1, %v4415_v47, -inf }
 0x428   : > { %1368 = vmax.xlane.f32.xlu1 %v1367_v51  ;;  %v3204_v52 = vpop.f32.mrb[21].mxu1  ;;  %v4437_v6 = vmul.f32 0.25, %v1211_v50 }
 0x429   : > { %v1214_v55 = vpop.f32.mrb[22].mxu1  ;;  %v1330_v13 = vpop.xlane.xlu0 %1329 }
 0x42a   : > { %1365 = vmax.xlane.f32.xlu0 %v1364_v56  ;;  %v3205_v57 = vpop.f32.mrb[23].mxu1  ;;  %v4433_v1 = vmul.f32 0.25, %v1214_v55  ;;  %v1358_v58 = vsel %vm935_vm1, %v4437_v6, -inf  ;;  %v1376_v15 = vsub.f32 %v4383_v2, %v1330_v13 }
 0x42b   : > { %v1333_v12 = vpop.xlane.xlu1 %1332 }
 0x42c   : > { %v1361_v8 = vsel %vm935_vm1, %v4433_v1, -inf  ;;  %v1377_v14 = vsub.f32 %v4385_v11, %v1333_v12  ;;  %v1392_v18 = vmul.f32 1.442695, %v1376_v15 }
 0x42e   : > { %1347 = vmax.xlane.f32.xlu0 %v1346_v59  ;;  %v1394_v17 = vmul.f32 1.442695, %v1377_v14 }
 0x42f   : > { %v1305_v60 = vpop.f32.mrb[24].mxu1 }
 0x430   : > { %v3216_v61 = vpop.f32.mrb[25].mxu1  ;;  %v4443_v54 = vmul.f32 0.25, %v1305_v60  ;;  %3657 = vpow2.f32 %v1394_v17 }
 0x431   : > { %v1308_v62 = vpop.f32.mrb[26].mxu1  ;;  %3659 = vpow2.f32 %v1392_v18 }
 0x432   : > { %v3217_v63 = vpop.f32.mrb[27].mxu1  ;;  %v4439_v7 = vmul.f32 0.25, %v1308_v62  ;;  %v1370_v10 = vsel %vm935_vm1, %v4443_v54, -inf }
 0x434   : > { %v1373_v9 = vsel %vm935_vm1, %v4439_v7, -inf }
 0x439   : > { %3469 = vrot.lane.b32.xlu1 %v4326_v3, %s3978_s3 }
 0x43a   : > { %v4457_v19 = vpop.eup %3657 }
 0x43b   : > { %v4459_v20 = vpop.eup %3659  ;;  %v1427_v21 = vsel %vm935_vm1, %v4457_v19, 0.0 }
 0x43c   : > { %v1424_v22 = vsel %vm935_vm1, %v4459_v20, 0.0 }
 0x444   : > { %3464 = vrot.lane.b32.xlu0 %v4326_v3, %s3977_s28 }
 0x45d   : > { %1350 = vmax.xlane.f32.xlu1 %v1349_v5 }
 0x461   : > { %1362 = vmax.xlane.f32.xlu1 %v1361_v8 }
 0x463   : > { %1359 = vmax.xlane.f32.xlu0 %v1358_v58 }
 0x465   : > { %1374 = vmax.xlane.f32.xlu1 %v1373_v9 }
 0x467   : > { %1371 = vmax.xlane.f32.xlu0 %v1370_v10 }
 0x476   : > { %3479 = vrot.lane.b32.xlu1 %v4326_v3, %s3980_s13 }
 0x47d   : > { %3474 = vrot.lane.b32.xlu0 %v4326_v3, %s3979_s18 }
 0x49a   : > { %1428 = vadd.xlane.f32.xlu1 %v1427_v21 }
 0x49c   : > { %1425 = vadd.xlane.f32.xlu0 %v1424_v22 }
 0x4a0   : > { %v1336_v23 = vpop.xlane.xlu0 %1335 }
 0x4a1   : > { %v1378_v11 = vsub.f32 %v4391_v16, %v1336_v23 }
 0x4a3   : > { %v1396_v2 = vmul.f32 1.442695, %v1378_v11 }
 0x4a5   : > { %3661 = vpow2.f32 %v1396_v2 }
 0x4ab   : > { %v1354_v24 = vpop.xlane.xlu0 %1353 }
 0x4ac   : > { %v1384_v25 = vsub.f32 %v4395_v26, %v1354_v24 }
 0x4ad   : > { %v1357_v27 = vpop.xlane.xlu1 %1356 }
 0x4ae   : > { %v1408_v28 = vmul.f32 1.442695, %v1384_v25  ;;  %v1385_v33 = vsub.f32 %v4399_v31, %v1357_v27 }
 0x4af   : > { %v4467_v32 = vpop.eup %3661  ;;  %v1339_v35 = vpop.xlane.xlu0 %1338 }
 0x4b0   : > { %3663 = vpow2.f32 %v1408_v28  ;;  %v1379_v36 = vsub.f32 %v4397_v29, %v1339_v35  ;;  %v1430_v37 = vsel %vm935_vm1, %v4467_v32, 0.0  ;;  %v1410_v40 = vmul.f32 1.442695, %v1385_v33 }
 0x4b1   : > { %v1345_v39 = vpop.xlane.xlu1 %1344  ;;  %1431 = vadd.xlane.f32.xlu0 %v1430_v37 }
 0x4b2   : > { %v1398_v16 = vmul.f32 1.442695, %v1379_v36  ;;  %v1381_v41 = vsub.f32 %v4403_v34, %v1345_v39 }
 0x4b3   : > { %v1342_v26 = vpop.xlane.xlu0 %1341 }
 0x4b4   : > { %3665 = vpow2.f32 %v1398_v16  ;;  %v1380_v42 = vsub.f32 %v4407_v38, %v1342_v26  ;;  %v1402_v31 = vmul.f32 1.442695, %v1381_v41 }
 0x4b5   : > { %v1369_v43 = vpop.xlane.xlu1 %1368  ;;  %3667 = vpow2.f32 %v1410_v40 }
 0x4b6   : > { %v1400_v44 = vmul.f32 1.442695, %v1380_v42  ;;  %v1389_v45 = vsub.f32 %v4415_v47, %v1369_v43 }
 0x4b7   : > { %v1366_v29 = vpop.xlane.xlu0 %1365 }
 0x4b8   : > { %3669 = vpow2.f32 %v1400_v44  ;;  %v1388_v48 = vsub.f32 %v4413_v46, %v1366_v29  ;;  %v1418_v51 = vmul.f32 1.442695, %v1389_v45 }
 0x4b9   : > { %3671 = vpow2.f32 %v1402_v31  ;;  %v3470_v15 = vpop.permute.xlu1 %3469 }
 0x4ba   : > { %v4477_v49 = vpop.eup %3663  ;;  %v1416_v50 = vmul.f32 1.442695, %v1388_v48  ;;  %v3472_v48 = vunpack.i.h.bf16 %v3470_v15 }
 0x4bb   : > { %v1348_v34 = vpop.xlane.xlu0 %1347  ;;  %v1448_v52 = vsel %vm935_vm1, %v4477_v49, 0.0 }
 0x4bc   : > { %3673 = vpow2.f32 %v1416_v50  ;;  %v1382_v38 = vsub.f32 %v4421_v53, %v1348_v34  ;;  %1449 = vadd.xlane.f32.xlu0 %v1448_v52  ;;  %v3471_v50 = vunpack.i.l.bf16 %v3470_v15 }
 0x4bd   : > { %3675 = vpow2.f32 %v1418_v51 }
 0x4be   : > { %v4482_v55 = vpop.eup %3665  ;;  %v1404_v47 = vmul.f32 1.442695, %v1382_v38  ;;  %v929_v38 = vpack.c.bf16 %v3472_v48, %v3471_v50 }
 0x4bf   : > { %v3465_v56 = vpop.permute.xlu0 %3464  ;;  %v1433_v46 = vsel %vm935_vm1, %v4482_v55, 0.0  ;;  %v4486_v60 = vpop.eup %3667 }
 0x4c0   : > { %3677 = vpow2.f32 %v1404_v47  ;;  %v3467_v57 = vunpack.i.h.bf16 %v3465_v56  ;;  %v3466_v59 = vunpack.i.l.bf16 %v3465_v56  ;;  %1434 = vadd.xlane.f32.xlu1 %v1433_v46  ;;  %v1451_v63 = vsel %vm935_vm1, %v4486_v60, 0.0 }
 0x4c2   : > { %v4488_v61 = vpop.eup %3669  ;;  %v928_v62 = vpack.c.bf16 %v3467_v57, %v3466_v59 }
 0x4c3   : > { %v1436_v53 = vsel %vm935_vm1, %v4488_v61, 0.0  ;;  %v4494_v5 = vpop.eup %3671 }
 0x4c4   : > { %3225 = vmatpush3.bf16.msra.mxu1 %v928_v62  ;;  %1437 = vadd.xlane.f32.xlu0 %v1436_v53  ;;  %v1439_v9 = vsel %vm935_vm1, %v4494_v5, 0.0 }
 0x4c5   : > { %1452 = vadd.xlane.f32.xlu1 %v1451_v63  ;;  %3236 = vmatprep.subr.bf16.mxu1 %v3974_v4 }
 0x4c6   : > { %v4497_v8 = vpop.eup %3673 }
 0x4c7   : > { %v1460_v58 = vsel %vm935_vm1, %v4497_v8, 0.0  ;;  %v4503_v10 = vpop.eup %3675 }
 0x4c8   : > { %1461 = vadd.xlane.f32.xlu0 %v1460_v58  ;;  %v1463_v14 = vsel %vm935_vm1, %v4503_v10, 0.0 }
 0x4c9   : > { %1440 = vadd.xlane.f32.xlu1 %v1439_v9 }
 0x4ca   : > { %v4505_v12 = vpop.eup %3677 }
 0x4cb   : > { %v1442_v13 = vsel %vm935_vm1, %v4505_v12, 0.0 }
 0x4cc   : > { %1443 = vadd.xlane.f32.xlu0 %v1442_v13 }
 0x4cd   : > { %1464 = vadd.xlane.f32.xlu1 %v1463_v14 }
 0x4ea   : > { %v1351_v17 = vpop.xlane.xlu1 %1350 }
 0x4eb   : > { %v1383_v18 = vsub.f32 %v4431_v0, %v1351_v17 }
 0x4ed   : > { %v1406_v21 = vmul.f32 1.442695, %v1383_v18 }
 0x4ee   : > { %v1363_v22 = vpop.xlane.xlu1 %1362 }
 0x4ef   : > { %3679 = vpow2.f32 %v1406_v21  ;;  %v1387_v23 = vsub.f32 %v4433_v1, %v1363_v22 }
 0x4f0   : > { %v1360_v11 = vpop.xlane.xlu0 %1359 }
 0x4f1   : > { %v1414_v2 = vmul.f32 1.442695, %v1387_v23  ;;  %v1386_v24 = vsub.f32 %v4437_v6, %v1360_v11 }
 0x4f2   : > { %v1375_v25 = vpop.xlane.xlu1 %1374 }
 0x4f3   : > { %3681 = vpow2.f32 %v1414_v2  ;;  %v1412_v27 = vmul.f32 1.442695, %v1386_v24  ;;  %v1391_v28 = vsub.f32 %v4439_v7, %v1375_v25 }
 0x4f4   : > { %v1372_v33 = vpop.xlane.xlu0 %1371 }
 0x4f5   : > { %3683 = vpow2.f32 %v1412_v27  ;;  %v1390_v35 = vsub.f32 %v4443_v54, %v1372_v33  ;;  %v1422_v36 = vmul.f32 1.442695, %v1391_v28 }
 0x4f6   : > { %v3480_v42 = vpop.permute.xlu1 %3479 }
 0x4f7   : > { %v1420_v0 = vmul.f32 1.442695, %v1390_v35  ;;  %v3482_v17 = vunpack.i.h.bf16 %v3480_v42  ;;  %v3481_v18 = vunpack.i.l.bf16 %v3480_v42 }
 0x4f8   : > { %v3475_v43 = vpop.permute.xlu0 %3474 }
 0x4f9   : > { %v4516_v37 = vpop.eup %3679  ;;  %3685 = vpow2.f32 %v1420_v0  ;;  %v3477_v62 = vunpack.i.h.bf16 %v3475_v43  ;;  %v3476_v53 = vunpack.i.l.bf16 %v3475_v43  ;;  %v931_v23 = vpack.c.bf16 %v3482_v17, %v3481_v18 }
 0x4fa   : > { %v1445_v1 = vsel %vm935_vm1, %v4516_v37, 0.0  ;;  %3687 = vpow2.f32 %v1422_v36 }
 0x4fb   : > { %1446 = vadd.xlane.f32.xlu1 %v1445_v1  ;;  %v930_v13 = vpack.c.bf16 %v3477_v62, %v3476_v53 }
 0x4fd   : > { %v4520_v6 = vpop.eup %3681 }
 0x4fe   : > { %v1457_v39 = vsel %vm935_vm1, %v4520_v6, 0.0 }
 0x4ff   : > { %v4524_v7 = vpop.eup %3683  ;;  %1458 = vadd.xlane.f32.xlu1 %v1457_v39 }
 0x500   : > { %v1454_v54 = vsel %vm935_vm1, %v4524_v7, 0.0 }
 0x501   : > { %1455 = vadd.xlane.f32.xlu0 %v1454_v54 }
 0x503   : > { %v4528_v16 = vpop.eup %3685 }
 0x504   : > { %v1466_v40 = vsel %vm935_vm1, %v4528_v16, 0.0  ;;  %v4532_v41 = vpop.eup %3687 }
 0x505   : > { %1467 = vadd.xlane.f32.xlu1 %v1466_v40  ;;  %v1469_v26 = vsel %vm935_vm1, %v4532_v41, 0.0 }
 0x509   : > { %1470 = vadd.xlane.f32.xlu1 %v1469_v26 }
 0x517   : > { %3484 = vrot.lane.b32.xlu0 %v4326_v3, %s3981_s21 }
 0x51a   : > { %3489 = vrot.lane.b32.xlu1 %v4326_v3, %s3982_s12 }
 0x51b   : > { %3494 = vrot.lane.b32.xlu0 %v4326_v3, %s3983_s14 }
 0x527   : > { %v1429_v44 = vpop.xlane.xlu1 %1428 }
 0x528   : > { %3689 = vrcp.f32 %v1429_v44 }
 0x529   : > { %v1426_v31 = vpop.xlane.xlu0 %1425 }
 0x52a   : > { %3691 = vrcp.f32 %v1426_v31 }
 0x532   : > { %v3690_v45 = vpop.eup %3689 }
 0x533   : > { %v1489_v51 = vmul.f32 %v3690_v45, %v4457_v19 }
 0x534   : > { %v3692_v29 = vpop.eup %3691 }
 0x535   : > { %v1488_v34 = vmul.f32 %v3692_v29, %v4459_v20 }
 0x537   : > { %v1504_v52 = vpack.c.bf16 %v1489_v51, %v1488_v34 }
 0x539   : > { %3221 = vmatmul.mubr.msk.bf16.vlgmr.msra.gmra.mrb[12].mxu0 %vm935_vm1, %v1504_v52 }
 0x53a   : > { %3231 = vmatpush3.bf16.msra.mxu0 %v929_v38  ;;  %3232 = vmatprep.mubr.msk.bf16.mxu0 %vm3976_vm0, %v3974_v4 }
 0x53b   : > { %3242 = vmatprep.subr.bf16.mxu0 %v3974_v4 }
 0x53e   : > { %v1432_v3 = vpop.xlane.xlu0 %1431 }
 0x53f   : > { %3693 = vrcp.f32 %v1432_v3 }
 0x549   : > { %v1450_v56 = vpop.xlane.xlu0 %1449  ;;  %v3694_v19 = vpop.eup %3693 }
 0x54a   : > { %v1490_v63 = vmul.f32 %v3694_v19, %v4467_v32 }
 0x54d   : > { %v1435_v47 = vpop.xlane.xlu1 %1434 }
 0x54e   : > { %3695 = vrcp.f32 %v1435_v47 }
 0x551   : > { %v1438_v46 = vpop.xlane.xlu0 %1437 }
 0x552   : > { %v1453_v57 = vpop.xlane.xlu1 %1452  ;;  %3697 = vrcp.f32 %v1438_v46 }
 0x556   : > { %v1441_v20 = vpop.xlane.xlu1 %1440 }
 0x557   : > { %3699 = vrcp.f32 %v1441_v20 }
 0x558   : > { %v3696_v59 = vpop.eup %3695  ;;  %3701 = vrcp.f32 %v1453_v57 }
 0x559   : > { %v1491_v58 = vmul.f32 %v3696_v59, %v4482_v55  ;;  %3703 = vrcp.f32 %v1450_v56 }
 0x55a   : > { %v1465_v27 = vpop.xlane.xlu1 %1464 }
 0x55b   : > { %v1505_v9 = vpack.c.bf16 %v1491_v58, %v1490_v63 }
 0x55c   : > { %v3698_v14 = vpop.eup %3697 }
 0x55d   : > { %3227 = vmatmul.mubr.msk.bf16.vlgmr.msra.gmra.mrb[28].mxu1 %vm935_vm1, %v1505_v9  ;;  %v1492_v32 = vmul.f32 %v3698_v14, %v4488_v61  ;;  %v1462_v61 = vpop.xlane.xlu0 %1461 }
 0x55e   : > { %3237 = vmatpush3.bf16.msra.mxu1 %v930_v13  ;;  %3238 = vmatprep.mubr.msk.bf16.mxu1 %vm3976_vm0, %v3974_v4 }
 0x55f   : > { %3248 = vmatprep.subr.bf16.mxu1 %v3974_v4 }
 0x561   : > { %v3700_v15 = vpop.eup %3699 }
 0x562   : > { %v1493_v55 = vmul.f32 %v3700_v15, %v4494_v5  ;;  %v3702_v22 = vpop.eup %3701  ;;  %v1444_v5 = vpop.xlane.xlu0 %1443 }
 0x563   : > { %v3704_v11 = vpop.eup %3703  ;;  %v1497_v2 = vmul.f32 %v3702_v22, %v4486_v60  ;;  %3705 = vrcp.f32 %v1444_v5  ;;  %v3567_v22 = vld [vmem:[#allocation7 + $0x10] sm:$0xff]   ;;  %v3569_v5 = vld [vmem:[#allocation7 + $0x20] sm:$0xff]  }
 0x564   : > { %v1506_v21 = vpack.c.bf16 %v1493_v55, %v1492_v32  ;;  %v1496_v24 = vmul.f32 %v3704_v11, %v4477_v49  ;;  %v3566_v32 = vld [vmem:[#allocation7 + $0x8] sm:$0xff]  }
 0x566   : > { %3233 = vmatmul.mubr.msk.bf16.vlgmr.msra.gmra.mrb[16].mxu0 %vm935_vm1, %v1506_v21  ;;  %v1508_v25 = vpack.c.bf16 %v1497_v2, %v1496_v24 }
 0x567   : > { %3243 = vmatpush3.bf16.msra.mxu0 %v931_v23  ;;  %3244 = vmatprep.mubr.msk.bf16.mxu0 %vm3976_vm0, %v3974_v4 }
 0x568   : > { %3254 = vmatprep.subr.bf16.mxu0 %v3974_v4 }
 0x56d   : > { %v3706_v35 = vpop.eup %3705 }
 0x56e   : > { %3245 = vmatmul.mubr.msk.bf16.vlgmr.msra.gmra.mrb[20].mxu0 %vm935_vm1, %v1508_v25  ;;  %v1494_v54 = vmul.f32 %v3706_v35, %v4505_v12 }
 0x56f   : > { %3256 = vmatprep.mubr.msk.bf16.mxu0 %vm3976_vm0, %v3974_v4 }
 0x588   : > { %v1447_v28 = vpop.xlane.xlu1 %1446 }
 0x589   : > { %3707 = vrcp.f32 %v1447_v28 }
 0x58a   : > { %3709 = vrcp.f32 %v1465_v27 }
 0x58c   : > { %v1459_v33 = vpop.xlane.xlu1 %1458 }
 0x58d   : > { %3711 = vrcp.f32 %v1459_v33 }
 0x58e   : > { %v1456_v60 = vpop.xlane.xlu0 %1455 }
 0x58f   : > { %3713 = vrcp.f32 %v1456_v60 }
 0x590   : > { %3715 = vrcp.f32 %v1462_v61  ;;  %v3568_v61 = vld [vmem:[#allocation7 + $0x18] sm:$0xff]  }
 0x592   : > { %v3485_v49 = vpop.permute.xlu0 %3484  ;;  %v1468_v36 = vpop.xlane.xlu1 %1467 }
 0x593   : > { %v3708_v0 = vpop.eup %3707  ;;  %v3487_v1 = vunpack.i.h.bf16 %v3485_v49  ;;  %v3486_v39 = vunpack.i.l.bf16 %v3485_v49  ;;  %3717 = vrcp.f32 %v1468_v36  ;;  %v3570_v49 = vld [vmem:[#allocation7 + $0x28] sm:$0xff]   ;;  %v3571_v36 = vld [vmem:[#allocation7 + $0x30] sm:$0xff]  }
 0x594   : > { %v1495_v40 = vmul.f32 %v3708_v0, %v4516_v37  ;;  %v3710_v44 = vpop.eup %3709 }
 0x595   : > { %v932_v26 = vpack.c.bf16 %v3487_v1, %v3486_v39  ;;  %v1501_v38 = vmul.f32 %v3710_v44, %v4503_v10 }
 0x596   : > { %v1471_v42 = vpop.xlane.xlu1 %1470  ;;  %v1507_v43 = vpack.c.bf16 %v1495_v40, %v1494_v54  ;;  %v3495_v45 = vpop.permute.xlu0 %3494 }
 0x597   : > { %3719 = vrcp.f32 %v1471_v42  ;;  %v3712_v31 = vpop.eup %3711  ;;  %v3497_v50 = vunpack.i.h.bf16 %v3495_v45  ;;  %v3496_v51 = vunpack.i.l.bf16 %v3495_v45 }
 0x598   : > { %3239 = vmatmul.mubr.msk.bf16.vlgmr.msra.gmra.mrb[32].mxu1 %vm935_vm1, %v1507_v43  ;;  %v1499_v3 = vmul.f32 %v3712_v31, %v4520_v6  ;;  %v3572_v43 = vld [vmem:[#allocation7 + $0x38] sm:$0xff]  }
 0x599   : > { %v3714_v29 = vpop.eup %3713  ;;  %3249 = vmatpush3.bf16.msra.mxu1 %v932_v26  ;;  %3250 = vmatprep.mubr.msk.bf16.mxu1 %vm3976_vm0, %v3974_v4  ;;  %v934_v57 = vpack.c.bf16 %v3497_v50, %v3496_v51 }
 0x59a   : > { %v1498_v48 = vmul.f32 %v3714_v29, %v4524_v7  ;;  %v3490_v12 = vpop.permute.xlu1 %3489  ;;  %3260 = vmatprep.subr.bf16.mxu1 %v3974_v4  ;;  %v3716_v37 = vpop.eup %3715 }
 0x59b   : > { %v3492_v34 = vunpack.i.h.bf16 %v3490_v12  ;;  %v3491_v52 = vunpack.i.l.bf16 %v3490_v12  ;;  %v1500_v56 = vmul.f32 %v3716_v37, %v4497_v8 }
 0x59c   : > { %v1509_v46 = vpack.c.bf16 %v1499_v3, %v1498_v48 }
 0x59d   : > { %v933_v47 = vpack.c.bf16 %v3492_v34, %v3491_v52  ;;  %v3718_v19 = vpop.eup %3717  ;;  %v1510_v7 = vpack.c.bf16 %v1501_v38, %v1500_v56 }
 0x59e   : > { %v1502_v8 = vmul.f32 %v3718_v19, %v4528_v16  ;;  %v3565_v16 = vld [vmem:[#allocation7] sm:$0xff]  }
 0x59f   : > { %3255 = vmatpush3.bf16.msra.mxu0 %v933_v47 }
 0x5a0   : > { %3251 = vmatmul.mubr.msk.bf16.vlgmr.msra.gmra.mrb[36].mxu1 %vm935_vm1, %v1509_v46  ;;  %3266 = vmatprep.subr.bf16.mxu0 %v3974_v4 }
 0x5a1   : > { %v3720_v20 = vpop.eup %3719  ;;  %3261 = vmatpush3.bf16.msra.mxu1 %v934_v57  ;;  %3262 = vmatprep.mubr.msk.bf16.mxu1 %vm3976_vm0, %v3974_v4 }
 0x5a2   : > { %v1503_v10 = vmul.f32 %v3720_v20, %v4532_v41  ;;  %3257 = vmatmul.mubr.msk.bf16.vlgmr.msra.gmra.mrb[24].mxu0 %vm935_vm1, %v1510_v7 }
 0x5a3   : > { %3282 = vmatprep.mubr.msk.bf16.mxu0 %vm3976_vm0, %v3974_v4  ;;  %3267 = vmatpush3.bf16.msra.mxu0 %v3565_v16 }
 0x5a4   : > { %v1511_v6 = vpack.c.bf16 %v1503_v10, %v1502_v8  ;;  %3268 = vmatprep.subr.bf16.mxu0 %v3974_v4 }
 0x5a7   : > { %3269 = vmatpush3.bf16.msra.mxu0 %v3566_v32 }
 0x5a8   : > { %3263 = vmatmul.mubr.msk.bf16.vlgmr.msra.gmra.mrb[40].mxu1 %vm935_vm1, %v1511_v6  ;;  %3270 = vmatprep.subr.bf16.mxu0 %v3974_v4 }
 0x5a9   : > { %2342 = vmatprep.mubr.bf16.mxu1 %v3975_v30 }
 0x5ab   : > { %3271 = vmatpush3.bf16.msra.mxu0 %v3567_v22 }
 0x5ac   : > { %3272 = vmatprep.subr.bf16.mxu0 %v3974_v4 }
 0x5af   : > { %3273 = vmatpush3.bf16.msra.mxu0 %v3568_v61 }
 0x5b0   : > { %3274 = vmatprep.subr.bf16.mxu0 %v3974_v4 }
 0x5b3   : > { %3275 = vmatpush3.bf16.msra.mxu0 %v3569_v5 }
 0x5b4   : > { %3276 = vmatprep.subr.bf16.mxu0 %v3974_v4 }
 0x5b7   : > { %3277 = vmatpush3.bf16.msra.mxu0 %v3570_v49  ;;  %v3742_v49 = vld [vmem:[%s4266_s26 + $0x8] sm:$0xff] }
 0x5b8   : > { %3278 = vmatprep.subr.bf16.mxu0 %v3974_v4 }
 0x5bb   : > { %3279 = vmatpush3.bf16.msra.mxu0 %v3571_v36 }
 0x5bc   : > { %3280 = vmatprep.subr.bf16.mxu0 %v3974_v4 }
 0x5bf   : > { %3281 = vmatpush3.bf16.msra.mxu0 %v3572_v43 }
 0x60c   : > { %v4586_v59 = vpop.f32.mrb[12].mxu0 }
 0x60d   : > { %v3222_v62 = vpop.f32.mrb[13].mxu0 }
 0x60e   : > { %v4588_v53 = vpop.f32.mrb[14].mxu0 }
 0x60f   : > { %v3223_v63 = vpop.f32.mrb[15].mxu0 }
 0x630   : > { %v1593_v58 = vpop.f32.mrb[28].mxu1 }
 0x631   : > { %v3228_v41 = vpop.f32.mrb[29].mxu1 }
 0x632   : > { %v1596_v9 = vpop.f32.mrb[30].mxu1 }
 0x633   : > { %v3498_v13 = vpack.i.bf16 %v1596_v9, %v1593_v58  ;;  %v3229_v14 = vpop.f32.mrb[31].mxu1 }
 0x635   : > { %3499 = vrot.lane.b32.xlu1 %v3498_v13, %s3983_s14  ;;  %s489_s14 = scalar_lea.vmem [#allocation11], %s2925_s11  ;;  %s2790_s11 = scalar_lea.sflag [#allocation4], %s4260_s15 }
 0x636   : > { %s2803_s9 = sshll.u32 %s489_s14, 4  ;;  %s4648_s9 = int_to_ptr.vmem [resolvable:$true] %s2803_s9 }
 0x639   : > { %v1637_v15 = vpop.f32.mrb[16].mxu0 }
 0x63a   : > { %v3234_v17 = vpop.f32.mrb[17].mxu0 }
 0x63b   : > { %v1640_v18 = vpop.f32.mrb[18].mxu0 }
 0x63c   : > { %v3503_v55 = vpack.i.bf16 %v1640_v18, %v1637_v15  ;;  %v3235_v21 = vpop.f32.mrb[19].mxu0 }
 0x63e   : > { %3504 = vrot.lane.b32.xlu0 %v3503_v55, %s3982_s12  ;;  %s4739_s12 = sld [smem:[#allocation20_spill]] }
 0x641   : > { %v1725_v23 = vpop.f32.mrb[20].mxu0 }
 0x642   : > { %v3246_v11 = vpop.f32.mrb[21].mxu0 }
 0x643   : > { %v1728_v2 = vpop.f32.mrb[22].mxu0 }
 0x644   : > { %v3513_v24 = vpack.i.bf16 %v1728_v2, %v1725_v23  ;;  %v3247_v25 = vpop.f32.mrb[23].mxu0 }
 0x646   : > { %3514 = vrot.lane.b32.xlu0 %v3513_v24, %s3980_s13  ;;  %v2973_v24 = vld [vmem:[%s4703_s5] ss:$0 sm:$0xff] }
 0x66b   : > { %v1681_v27 = vpop.f32.mrb[32].mxu1 }
 0x66c   : > { %v3240_v28 = vpop.f32.mrb[33].mxu1 }
 0x66d   : > { %v1684_v33 = vpop.f32.mrb[34].mxu1  ;;  %v3741_v28 = vld [vmem:[%s4266_s26] sm:$0xff] }
 0x66e   : > { %v3508_v60 = vpack.i.bf16 %v1684_v33, %v1681_v27  ;;  %v3241_v35 = vpop.f32.mrb[35].mxu1 }
 0x670   : > { %3509 = vrot.lane.b32.xlu1 %v3508_v60, %s3981_s21 }
 0x673   : > { %v1769_v0 = vpop.f32.mrb[36].mxu1 }
 0x674   : > { %v3252_v1 = vpop.f32.mrb[37].mxu1 }
 0x675   : > { %v1772_v39 = vpop.f32.mrb[38].mxu1  ;;  %v1813_v54 = vpop.f32.mrb[24].mxu0  ;;  %v3576_v1 = vld [vmem:[#allocation8 + $0x8] ss:$16 sps:$4 sm:$0xff]  }
 0x676   : > { %v3518_v40 = vpack.i.bf16 %v1772_v39, %v1769_v0  ;;  %v3253_v26 = vpop.f32.mrb[39].mxu1  ;;  %v3258_v42 = vpop.f32.mrb[25].mxu0  ;;  %v3575_v0 = vld [vmem:[#allocation8 + $0x4] ss:$16 sps:$4 sm:$0xff]   ;;  %v3578_v39 = vld [vmem:[#allocation8 + $0xc] ss:$16 sps:$4 sm:$0xff]  }
 0x677   : > { %v1816_v44 = vpop.f32.mrb[26].mxu0  ;;  %2310 = vmatprep.subr.bf16.mxu1 %v3575_v0  ;;  %2353 = vmatprep.subr.bf16.mxu0 %v3578_v39  ;;  %v3579_v26 = vld [vmem:[#allocation8 + $0x20] ss:$16 sps:$4 sm:$0xff]   ;;  %v3582_v42 = vld [vmem:[#allocation8 + $0x28] ss:$16 sps:$4 sm:$0xff]  }
 0x678   : > { %v3523_v31 = vpack.i.bf16 %v1816_v44, %v1813_v54  ;;  %v3259_v45 = vpop.f32.mrb[27].mxu0  ;;  %3519 = vrot.lane.b32.xlu1 %v3518_v40, %s3979_s18  ;;  %v3581_v54 = vld [vmem:[#allocation8 + $0x24] ss:$16 sps:$4 sm:$0xff]   ;;  %v3584_v40 = vld [vmem:[#allocation8 + $0x2c] ss:$16 sps:$4 sm:$0xff]   ;;  %s4738_s18 = sld [smem:[#allocation19_spill]] }
 0x679   : > { %v3627_v0 = vld [vmem:[#allocation10 + $0x8] sm:$0xff]   ;;  %v3629_v39 = vld [vmem:[#allocation10 + $0x50] sm:$0xff]  }
 0x67a   : > { %3524 = vrot.lane.b32.xlu0 %v3523_v31, %s3978_s3  ;;  %s3889_s3 = sshll.u32 %s3984_s25, 4  ;;  %s3890_s3 = int_to_ptr.vmem [resolvable:$false] %s3889_s3 }
 0x67b   : > { %v1857_v29 = vpop.f32.mrb[40].mxu1  ;;  %p3892_p12 = scmp.lt.s32.totalorder %s4648_s9, %s3890_s3 }
 0x67c   : > { %v3264_v48 = vpop.f32.mrb[41].mxu1 }
 0x67d   : > { %v1860_v12 = vpop.f32.mrb[42].mxu1 }
 0x67e   : > { %v3528_v37 = vpack.i.bf16 %v1860_v12, %v1857_v29  ;;  %v3265_v50 = vpop.f32.mrb[43].mxu1 }
 0x67f   : > { %v3587_v50 = vld [vmem:[#allocation8 + $0x44] ss:$16 sps:$4 sm:$0xff]  }
 0x680   : > { %3529 = vrot.lane.b32.xlu1 %v3528_v37, %s3977_s28  ;;  %s3885_s28 = scalar_lea.vmem %s4648_s9, 256 }
 0x681   : > { %p3886_p3 = scmp.ne.s32.totalorder %s4648_s9, %s3885_s28 }
 0x683   : > { %p3887_p5 = pnand %p3886_p3, %p4208_p10 }
 0x685   : > { %p3888_p7 = pneg %p3887_p5 }
 0x6a7   : > { %v3500_v51 = vpop.permute.xlu1 %3499 }
 0x6a8   : > { %v3502_v4 = vunpack.i.h.bf16 %v3500_v51  ;;  %v3501_v38 = vunpack.i.l.bf16 %v3500_v51  ;;  %v3590_v51 = vld [vmem:[#allocation8 + $0x4c] ss:$16 sps:$4 sm:$0xff]  }
 0x6aa   : > { %v1921_v7 = vsel %vm935_vm1, %v4588_v53, %v3502_v4  ;;  %v1920_v20 = vsel %vm935_vm1, %v4586_v59, %v3501_v38  ;;  %v3593_v4 = vld [vmem:[#allocation8 + $0x64] ss:$16 sps:$4 sm:$0xff]   ;;  %v3596_v38 = vld [vmem:[#allocation8 + $0x6c] ss:$16 sps:$4 sm:$0xff]  }
 0x6b0   : > { %v3505_v34 = vpop.permute.xlu0 %3504 }
 0x6b1   : > { %v3507_v3 = vunpack.i.h.bf16 %v3505_v34  ;;  %v3506_v47 = vunpack.i.l.bf16 %v3505_v34  ;;  %v3585_v34 = vld [vmem:[#allocation8 + $0x40] ss:$16 sps:$4 sm:$0xff]  }
 0x6b3   : > { %v1923_v10 = vsel %vm1922_vm2, %v1920_v20, %v3506_v47  ;;  %v1924_v8 = vsel %vm1922_vm2, %v1921_v7, %v3507_v3  ;;  %v3591_v3 = vld [vmem:[#allocation8 + $0x60] ss:$16 sps:$4 sm:$0xff]   ;;  %v3594_v47 = vld [vmem:[#allocation8 + $0x68] ss:$16 sps:$4 sm:$0xff]   ;;  %v3605_v20 = vld [vmem:[#allocation8 + $0xa4] ss:$16 sps:$4 sm:$0xff]  }
 0x6b4   : > { %v3603_v7 = vld [vmem:[#allocation8 + $0xa0] ss:$16 sps:$4 sm:$0xff]  }
 0x6b8   : > { %v3515_v56 = vpop.permute.xlu0 %3514 }
 0x6b9   : > { %v3517_v9 = vunpack.i.h.bf16 %v3515_v56  ;;  %v3516_v13 = vunpack.i.l.bf16 %v3515_v56  ;;  %v3599_v56 = vld [vmem:[#allocation8 + $0x84] ss:$16 sps:$4 sm:$0xff]  }
 0x6e2   : > { %v3510_v52 = vpop.permute.xlu1 %3509 }
 0x6e3   : > { %v3512_v46 = vunpack.i.h.bf16 %v3510_v52  ;;  %v3511_v57 = vunpack.i.l.bf16 %v3510_v52  ;;  %v3588_v52 = vld [vmem:[#allocation8 + $0x48] ss:$16 sps:$4 sm:$0xff]  }
 0x6e5   : > { %v1927_v6 = vsel %vm1925_vm3, %v1924_v8, %v3512_v46  ;;  %v1926_v62 = vsel %vm1925_vm3, %v1923_v10, %v3511_v57  ;;  %v3602_v46 = vld [vmem:[#allocation8 + $0x8c] ss:$16 sps:$4 sm:$0xff]   ;;  %v3597_v57 = vld [vmem:[#allocation8 + $0x80] ss:$16 sps:$4 sm:$0xff]   ;;  %v3606_v10 = vld [vmem:[#allocation8 + $0xa8] ss:$16 sps:$4 sm:$0xff]  }
 0x6e6   : > { %v1929_v14 = vsel %vm1928_vm4, %v1926_v62, %v3516_v13  ;;  %v1930_v15 = vsel %vm1928_vm4, %v1927_v6, %v3517_v9  ;;  %v3608_v8 = vld [vmem:[#allocation8 + $0xac] ss:$16 sps:$4 sm:$0xff]   ;;  %v3611_v6 = vld [vmem:[#allocation8 + $0xc4] ss:$16 sps:$4 sm:$0xff]   ;;  %v3615_v13 = vld [vmem:[#allocation8 + $0xe0] ss:$16 sps:$4 sm:$0xff]  }
 0x6e7   : > { %v3614_v62 = vld [vmem:[#allocation8 + $0xcc] ss:$16 sps:$4 sm:$0xff]  }
 0x6e8   : > { %v3620_v9 = vld [vmem:[#allocation8 + $0xec] ss:$16 sps:$4 sm:$0xff]  }
 0x6ea   : > { %v3520_v19 = vpop.permute.xlu1 %3519 }
 0x6eb   : > { %v3522_v63 = vunpack.i.h.bf16 %v3520_v19  ;;  %v3521_v58 = vunpack.i.l.bf16 %v3520_v19  ;;  %v3600_v19 = vld [vmem:[#allocation8 + $0x88] ss:$16 sps:$4 sm:$0xff]  }
 0x6ec   : > { %v3525_v41 = vpop.permute.xlu0 %3524 }
 0x6ed   : > { %v3527_v16 = vunpack.i.h.bf16 %v3525_v41  ;;  %v3526_v17 = vunpack.i.l.bf16 %v3525_v41  ;;  %v1933_v18 = vsel %vm1931_vm5, %v1930_v15, %v3522_v63  ;;  %v1932_v53 = vsel %vm1931_vm5, %v1929_v14, %v3521_v58  ;;  %v3609_v63 = vld [vmem:[#allocation8 + $0xc0] ss:$16 sps:$4 sm:$0xff]   ;;  %v3612_v58 = vld [vmem:[#allocation8 + $0xc8] ss:$16 sps:$4 sm:$0xff]   ;;  %v3617_v41 = vld [vmem:[#allocation8 + $0xe4] ss:$16 sps:$4 sm:$0xff]  }
 0x6ee   : > { %v3618_v14 = vld [vmem:[#allocation8 + $0xe8] ss:$16 sps:$4 sm:$0xff]   ;;  %v3621_v15 = vld [vmem:[#allocation10 + $0x40] sm:$0xff]  }
 0x6ef   : > { %v1935_v21 = vsel %vm1934_vm6, %v1932_v53, %v3526_v17  ;;  %v1936_v22 = vsel %vm1934_vm6, %v1933_v18, %v3527_v16  ;;  %v3622_v16 = vld [vmem:[#allocation10 + $0xc0] sm:$0xff]  }
 0x6f2   : > { %v3530_v59 = vpop.permute.xlu1 %3529 }
 0x6f3   : > { %v3532_v32 = vunpack.i.h.bf16 %v3530_v59  ;;  %v3531_v55 = vunpack.i.l.bf16 %v3530_v59 }
 0x6f5   : > { %v1939_v23 = vsel %vm1937_vm7, %v1936_v22, %v3532_v32  ;;  %v1938_v11 = vsel %vm1937_vm7, %v1935_v21, %v3531_v55 }
 0x6f6   : > { %v1940_v2 = vpack.c.bf16 %v1939_v23, %v1938_v11  ;;  %v2982_v23 = vld [vmem:[%s4704_s6] ss:$0 sm:$0xff] }
 0x6f8   : > { %3283 = vmatmul.mubr.bf16.vlgmr.msra.gmra.mrb[28].mxu0 %v1940_v2 }
 0x6f9   : > { %2385 = vmatprep.mubr.bf16.mxu0 %v3975_v30  ;;  %v3573_v30 = vld [vmem:[#allocation8] ss:$16 sps:$4 sm:$0xff]   ;;  %2354 = vmatpush1.bf16.msra.mxu0 %v3576_v1  ;;  %v3628_v1 = vld [vmem:[#allocation10 + $0x88] sm:$0xff]  }
 0x6fa   : > { %2311 = vmatpush1.bf16.msra.mxu1 %v3573_v30  ;;  %2355 = vmatprep.subr.bf16.mxu0 %v3584_v40  ;;  %v3626_v30 = vld [vmem:[#allocation10 + $0xc8] sm:$0xff]   ;;  %v3631_v40 = vld [vmem:[#allocation10 + $0x10] sm:$0xff]  }
 0x6fb   : > { %2312 = vmatprep.subr.bf16.mxu1 %v3581_v54  ;;  %v3630_v54 = vld [vmem:[#allocation10 + $0xd0] sm:$0xff]  }
 0x6fd   : > { %2356 = vmatpush1.bf16.msra.mxu0 %v3582_v42  ;;  %v3633_v42 = vld [vmem:[#allocation10 + $0x58] sm:$0xff]  }
 0x6fe   : > { %2313 = vmatpush1.bf16.msra.mxu1 %v3579_v26  ;;  %2357 = vmatprep.subr.bf16.mxu0 %v3590_v51  ;;  %v3632_v26 = vld [vmem:[#allocation10 + $0x90] sm:$0xff]   ;;  %v3643_v51 = vld [vmem:[#allocation10 + $0x28] sm:$0xff]  }
 0x6ff   : > { %2314 = vmatprep.subr.bf16.mxu1 %v3587_v50  ;;  %v3642_v50 = vld [vmem:[#allocation10 + $0xe8] sm:$0xff]  }
 0x701   : > { %2358 = vmatpush1.bf16.msra.mxu0 %v3588_v52  ;;  %v3645_v52 = vld [vmem:[#allocation10 + $0x70] sm:$0xff]  }
 0x702   : > { %2315 = vmatpush1.bf16.msra.mxu1 %v3585_v34  ;;  %2359 = vmatprep.subr.bf16.mxu0 %v3596_v38  ;;  %v3644_v34 = vld [vmem:[#allocation10 + $0xa8] sm:$0xff]   ;;  %v3647_v38 = vld [vmem:[#allocation10 + $0x30] sm:$0xff]  }
 0x703   : > { %2316 = vmatprep.subr.bf16.mxu1 %v3593_v4  ;;  %v3646_v4 = vld [vmem:[#allocation10 + $0xf0] sm:$0xff]  }
 0x705   : > { %2360 = vmatpush1.bf16.msra.mxu0 %v3594_v47  ;;  %v3649_v47 = vld [vmem:[#allocation10 + $0x78] sm:$0xff]  }
 0x706   : > { %2317 = vmatpush1.bf16.msra.mxu1 %v3591_v3  ;;  %2361 = vmatprep.subr.bf16.mxu0 %v3602_v46  ;;  %v3648_v3 = vld [vmem:[#allocation10 + $0xb0] sm:$0xff]   ;;  %v3651_v46 = vld [vmem:[#allocation10 + $0x38] sm:$0xff]  }
 0x707   : > { %2318 = vmatprep.subr.bf16.mxu1 %v3599_v56  ;;  %v3650_v56 = vld [vmem:[#allocation10 + $0xf8] sm:$0xff]  }
 0x709   : > { %2362 = vmatpush1.bf16.msra.mxu0 %v3600_v19  ;;  %v2130_v19 = vlaneseq }
 0x70a   : > { %2319 = vmatpush1.bf16.msra.mxu1 %v3597_v57  ;;  %2363 = vmatprep.subr.bf16.mxu0 %v3608_v8  ;;  %v3652_v57 = vld [vmem:[#allocation10 + $0xb8] sm:$0xff]   ;;  %v2128_v8 = vld [vmem:[%s4738_s18] sm:$0xf]  ;;  %s3891_s18 = scalar_lea.vmem %s3890_s3, 512 }
 0x70b   : > { %2320 = vmatprep.subr.bf16.mxu1 %v3605_v20  ;;  %p3893_p2 = scmp.lt.s32.totalorder %s3891_s18, %s3885_s28 }
 0x70d   : > { %2364 = vmatpush1.bf16.msra.mxu0 %v3606_v10  ;;  %p3894_p1 = por %p3893_p2, %p3892_p12 }
 0x70e   : > { %2321 = vmatpush1.bf16.msra.mxu1 %v3603_v7  ;;  %2365 = vmatprep.subr.bf16.mxu0 %v3614_v62  ;;  %v2131_v7 = vshrl.u32 %v2130_v19, 7 }
 0x70f   : > { %2322 = vmatprep.subr.bf16.mxu1 %v3611_v6  ;;  %p3895_p13 = pnand %p3894_p1, %p3888_p7 }
 0x710   : > { %v2132_v20 = vsub.s32 0, %v2131_v7  ;;  %v2140_v10 = vsub.s32 2, %v2131_v7  ;;  %v2136_v6 = vsub.s32 1, %v2131_v7  ;;  %v2144_v62 = vsub.s32 3, %v2131_v7 }
 0x711   : > { %2366 = vmatpush1.bf16.msra.mxu0 %v3612_v58 }
 0x712   : > { %2323 = vmatpush1.bf16.msra.mxu1 %v3609_v63  ;;  %2367 = vmatprep.subr.bf16.mxu0 %v3620_v9  ;;  %v2133_v63 = vrot.slane %v2128_v8, %v2132_v20  ;;  %v2141_v58 = vrot.slane %v2128_v8, %v2140_v10  ;;  %v2145_v9 = vrot.slane %v2128_v8, %v2144_v62 }
 0x713   : > { %2324 = vmatprep.subr.bf16.mxu1 %v3617_v41  ;;  %v2137_v41 = vrot.slane %v2128_v8, %v2136_v6 }
 0x715   : > { %2368 = vmatpush1.bf16.msra.mxu0 %v3618_v14 }
 0x716   : > { %2325 = vmatpush1.bf16.msra.mxu1 %v3615_v13  ;;  %3128 = vmatprep.subr.bf16.mxu0 %v3622_v16 }
 0x717   : > { %3106 = vmatprep.subr.bf16.mxu1 %v3621_v15 }
 0x7cb   : > { %v2046_v25 = vpop.f32.mrb[28].mxu0 }
 0x7cc   : > { %v2047_v61 = vadd.f32 %v2973_v24, %v2046_v25  ;;  %v3284_v5 = vpop.f32.mrb[29].mxu0  ;;  %v2983_v25 = vld [vmem:[%s4705_s7] ss:$0 sm:$0xff] }
 0x7cd   : > { %v2049_v27 = vpop.f32.mrb[30].mxu0 }
 0x7ce   : > { %v4613_v33 = vadd.f32 %v3741_v28, %v2047_v61  ;;  %v2050_v60 = vadd.f32 %v2973_v24, %v2049_v27  ;;  %v3285_v35 = vpop.f32.mrb[31].mxu0  ;;  %v3623_v28 = vld [vmem:[#allocation10] sm:$0xff]  }
 0x7d0   : > { %v4616_v36 = vadd.f32 %v3742_v49, %v2050_v60  ;;  %2057 = vadd.xlane.f32.xlu0 %v4613_v33  ;;  %v3624_v60 = vld [vmem:[#allocation10 + $0x80] sm:$0xff]   ;;  %v3625_v49 = vld [vmem:[#allocation10 + $0x48] sm:$0xff]  }
 0x7d2   : > { %2059 = vadd.xlane.f32.xlu1 %v4616_v36 }
 0x85d   : > { %v2058_v43 = vpop.xlane.xlu0 %2057 }
 0x85e   : > { %v2061_v44 = vmul.f32 0.0078125, %v2058_v43  ;;  %v3634_v43 = vld [vmem:[#allocation10 + $0xd8] sm:$0xff]  }
 0x85f   : > { %v2060_v31 = vpop.xlane.xlu1 %2059 }
 0x860   : > { %v4621_v45 = vsub.f32 %v4613_v33, %v2061_v44  ;;  %v2062_v29 = vmul.f32 0.0078125, %v2060_v31  ;;  %v3635_v44 = vld [vmem:[#allocation10 + $0x18] sm:$0xff]  }
 0x861   : > { %v3636_v31 = vld [vmem:[#allocation10 + $0x98] sm:$0xff]  }
 0x862   : > { %v4624_v48 = vsub.f32 %v4616_v36, %v2062_v29  ;;  %v2065_v12 = vmul.f32 %v4621_v45, %v4621_v45  ;;  %v3638_v29 = vld [vmem:[#allocation10 + $0xe0] sm:$0xff]  }
 0x864   : > { %2067 = vadd.xlane.f32.xlu0 %v2065_v12  ;;  %v2066_v37 = vmul.f32 %v4624_v48, %v4624_v48  ;;  %v3640_v12 = vld [vmem:[#allocation10 + $0xa0] sm:$0xff]  }
 0x868   : > { %2069 = vadd.xlane.f32.xlu0 %v2066_v37  ;;  %v3641_v37 = vld [vmem:[#allocation10 + $0x68] sm:$0xff]  }
 0x8f1   : > { %v2068_v17 = vpop.xlane.xlu0 %2067 }
 0x8f2   : > { %v2071_v18 = vmul.f32 0.0078125, %v2068_v17 }
 0x8f4   : > { %v2073_v53 = vadd.f32 1e-05, %v2071_v18 }
 0x8f5   : > { %v2070_v59 = vpop.xlane.xlu0 %2069 }
 0x8f6   : > { %3721 = vrsqrt.f32 %v2073_v53  ;;  %v2072_v32 = vmul.f32 0.0078125, %v2070_v59 }
 0x8f8   : > { %v2074_v55 = vadd.f32 1e-05, %v2072_v32 }
 0x8fa   : > { %3723 = vrsqrt.f32 %v2074_v55 }
 0x900   : > { %v3722_v21 = vpop.eup %3721 }
 0x901   : > { %v2077_v22 = vmul.f32 %v3722_v21, %v4621_v45  ;;  %v3637_v45 = vld [vmem:[#allocation10 + $0x60] sm:$0xff]  }
 0x903   : > { %v2085_v24 = vmul.f32 %v2982_v23, %v2077_v22 }
 0x904   : > { %v3724_v11 = vpop.eup %3723 }
 0x905   : > { %v2078_v2 = vmul.f32 %v3724_v11, %v4624_v48  ;;  %v2093_v5 = vadd.f32 %v2983_v25, %v2085_v24  ;;  %v3639_v48 = vld [vmem:[#allocation10 + $0x20] sm:$0xff]  }
 0x907   : > { %v2086_v61 = vmul.f32 %v2982_v23, %v2078_v2 }
 0x909   : > { %v2094_v27 = vadd.f32 %v2983_v25, %v2086_v61 }
 0x90b   : > { %v2095_v35 = vpack.c.bf16 %v2094_v27, %v2093_v5 }
 0x90d   : > { %2343 = vmatmul.mubr.bf16.vlgmr.msra.gmra.mrb[44].mxu1 %v2095_v35  ;;  %2386 = vmatmul.mubr.bf16.vlgmr.msra.gmra.mrb[32].mxu0 %v2095_v35 }
 0x90e   : > { %3107 = vmatpush3.bf16.msra.mxu1 %v3623_v28  ;;  %3129 = vmatpush3.bf16.msra.mxu0 %v3624_v60 }
 0x90f   : > { %3108 = vmatprep.subr.bf16.mxu1 %v3625_v49  ;;  %3130 = vmatprep.subr.bf16.mxu0 %v3626_v30 }
 0x912   : > { %3109 = vmatpush3.bf16.msra.mxu1 %v3627_v0  ;;  %3131 = vmatpush3.bf16.msra.mxu0 %v3628_v1 }
 0x913   : > { %3110 = vmatprep.subr.bf16.mxu1 %v3629_v39  ;;  %3132 = vmatprep.subr.bf16.mxu0 %v3630_v54 }
 0x916   : > { %3111 = vmatpush3.bf16.msra.mxu1 %v3631_v40  ;;  %3133 = vmatpush3.bf16.msra.mxu0 %v3632_v26 }
 0x917   : > { %3112 = vmatprep.subr.bf16.mxu1 %v3633_v42  ;;  %3134 = vmatprep.subr.bf16.mxu0 %v3634_v43 }
 0x91a   : > { %3113 = vmatpush3.bf16.msra.mxu1 %v3635_v44  ;;  %3135 = vmatpush3.bf16.msra.mxu0 %v3636_v31 }
 0x91b   : > { %3114 = vmatprep.subr.bf16.mxu1 %v3637_v45  ;;  %3136 = vmatprep.subr.bf16.mxu0 %v3638_v29 }
 0x91e   : > { %3115 = vmatpush3.bf16.msra.mxu1 %v3639_v48  ;;  %3137 = vmatpush3.bf16.msra.mxu0 %v3640_v12 }
 0x91f   : > { %3116 = vmatprep.subr.bf16.mxu1 %v3641_v37  ;;  %3138 = vmatprep.subr.bf16.mxu0 %v3642_v50 }
 0x922   : > { %3117 = vmatpush3.bf16.msra.mxu1 %v3643_v51  ;;  %3139 = vmatpush3.bf16.msra.mxu0 %v3644_v34 }
 0x923   : > { %3118 = vmatprep.subr.bf16.mxu1 %v3645_v52  ;;  %3140 = vmatprep.subr.bf16.mxu0 %v3646_v4 }
 0x926   : > { %3119 = vmatpush3.bf16.msra.mxu1 %v3647_v38  ;;  %3141 = vmatpush3.bf16.msra.mxu0 %v3648_v3 }
 0x927   : > { %3120 = vmatprep.subr.bf16.mxu1 %v3649_v47  ;;  %3142 = vmatprep.subr.bf16.mxu0 %v3650_v56 }
 0x92a   : > { %3121 = vmatpush3.bf16.msra.mxu1 %v3651_v46  ;;  %3143 = vmatpush3.bf16.msra.mxu0 %v3652_v57 }
 0x9e0   : > { %v2344_v13 = vpop.f32.mrb[44].mxu1  ;;  %v2387_v14 = vpop.f32.mrb[32].mxu0 }
 0x9e1   : > { %v2345_v15 = vadd.f32 %v2344_v13, %v2133_v63  ;;  %v2388_v16 = vadd.f32 %v2387_v14, %v2141_v58  ;;  %v2346_v17 = vpop.f32.mrb[45].mxu1  ;;  %v2389_v18 = vpop.f32.mrb[33].mxu0  ;;  %v3016_v13 = vld [vmem:[%s4739_s12] ss:$0 sm:$0xff] }
 0x9e2   : > { %v2347_v53 = vadd.f32 %v2346_v17, %v2137_v41  ;;  %v2390_v59 = vadd.f32 %v2389_v18, %v2145_v9  ;;  %v2348_v32 = vpop.f32.mrb[46].mxu1  ;;  %v2391_v55 = vpop.f32.mrb[34].mxu0 }
 0x9e3   : > { %v2404_v21 = vmul.f32 0.70710677, %v2345_v15  ;;  %v2406_v22 = vmul.f32 0.70710677, %v2388_v16  ;;  %v2349_v2 = vadd.f32 %v2348_v32, %v2133_v63  ;;  %v2392_v24 = vadd.f32 %v2391_v55, %v2141_v58  ;;  %v2350_v25 = vpop.f32.mrb[47].mxu1  ;;  %v2393_v61 = vpop.f32.mrb[35].mxu0 }
 0x9e4   : > { %v2405_v23 = vmul.f32 0.70710677, %v2347_v53  ;;  %v2407_v11 = vmul.f32 0.70710677, %v2390_v59  ;;  %v2351_v5 = vadd.f32 %v2350_v25, %v2137_v41  ;;  %v2394_v27 = vadd.f32 %v2393_v61, %v2145_v9 }
 0x9e5   : > { %3725 = verf.f32 %v2404_v21  ;;  %v2408_v28 = vmul.f32 0.70710677, %v2349_v2  ;;  %v2410_v60 = vmul.f32 0.70710677, %v2392_v24  ;;  %v2396_v26 = vmul.f32 0.5, %v2345_v15 }
 0x9e6   : > { %3727 = verf.f32 %v2406_v22  ;;  %v2409_v35 = vmul.f32 0.70710677, %v2351_v5  ;;  %v2411_v49 = vmul.f32 0.70710677, %v2394_v27  ;;  %v2398_v42 = vmul.f32 0.5, %v2388_v16 }
 0x9e7   : > { %3729 = verf.f32 %v2405_v23  ;;  %v2397_v31 = vmul.f32 0.5, %v2347_v53  ;;  %v2400_v29 = vmul.f32 0.5, %v2349_v2  ;;  %v2399_v37 = vmul.f32 0.5, %v2390_v59 }
 0x9e8   : > { %3731 = verf.f32 %v2407_v11  ;;  %v2402_v51 = vmul.f32 0.5, %v2392_v24  ;;  %v2401_v3 = vmul.f32 0.5, %v2351_v5  ;;  %v2403_v57 = vmul.f32 0.5, %v2394_v27 }
 0x9e9   : > { %3733 = verf.f32 %v2408_v28 }
 0x9ea   : > { %3735 = verf.f32 %v2410_v60 }
 0x9eb   : > { %3737 = verf.f32 %v2409_v35 }
 0x9ec   : > { %3739 = verf.f32 %v2411_v49 }
 0x9ef   : > { %v3726_v30 = vpop.eup %3725 }
 0x9f0   : > { %v3728_v0 = vpop.eup %3727  ;;  %v2420_v54 = vadd.f32 1.0, %v3726_v30 }
 0x9f1   : > { %v3730_v1 = vpop.eup %3729  ;;  %v2422_v43 = vadd.f32 1.0, %v3728_v0 }
 0x9f2   : > { %v3732_v39 = vpop.eup %3731  ;;  %v2421_v45 = vadd.f32 1.0, %v3730_v1  ;;  %v2428_v4 = vmul.f32 %v2420_v54, %v2396_v26 }
 0x9f3   : > { %v3734_v40 = vpop.eup %3733  ;;  %v2423_v50 = vadd.f32 1.0, %v3732_v39  ;;  %v2430_v56 = vmul.f32 %v2422_v43, %v2398_v42 }
 0x9f4   : > { %v3736_v44 = vpop.eup %3735  ;;  %v2424_v48 = vadd.f32 1.0, %v3734_v40  ;;  %v2429_v7 = vmul.f32 %v2421_v45, %v2397_v31 }
 0x9f5   : > { %v3738_v12 = vpop.eup %3737  ;;  %v2426_v34 = vadd.f32 1.0, %v3736_v44  ;;  %v2431_v8 = vmul.f32 %v2423_v50, %v2399_v37 }
 0x9f6   : > { %v3740_v52 = vpop.eup %3739  ;;  %v2432_v38 = vmul.f32 %v2424_v48, %v2400_v29  ;;  %v2425_v47 = vadd.f32 1.0, %v3738_v12 }
 0x9f7   : > { %v2434_v46 = vmul.f32 %v2426_v34, %v2402_v51  ;;  %v2427_v19 = vadd.f32 1.0, %v3740_v52 }
 0x9f8   : > { %v2436_v20 = vpack.c.bf16 %v2432_v38, %v2428_v4  ;;  %v2433_v10 = vmul.f32 %v2425_v47, %v2401_v3 }
 0x9f9   : > { %v2438_v6 = vpack.c.bf16 %v2434_v46, %v2430_v56  ;;  %v2435_v62 = vmul.f32 %v2427_v19, %v2403_v57 }
 0x9fa   : > { %v2437_v63 = vpack.c.bf16 %v2433_v10, %v2429_v7 }
 0x9fb   : > { %v2439_v58 = vpack.c.bf16 %v2435_v62, %v2431_v8 }
 0x9fc   : > { %2735 = vmatprep.mubr.bf16.mxu1 %v2437_v63 }
 0x9fd   : > { %2776 = vmatprep.mubr.bf16.mxu0 %v2439_v58  ;;  %2736 = vmatmul.mubr.bf16.vlgmr.msra.gmra.mrb[48].mxu1 %v2436_v20 }
 0x9fe   : > { %2777 = vmatmul.mubr.bf16.vlgmr.msra.gmra.mrb[36].mxu0 %v2438_v6 }
 0xad0   : > { %v3122_v41 = vpop.f32.mrb[48].mxu1 }
 0xad1   : > { %v3144_v9 = vpop.f32.mrb[36].mxu0  ;;  %v3123_v14 = vpop.f32.mrb[49].mxu1 }
 0xad2   : > { %v3124_v15 = vadd.f32 %v3123_v14, %v3122_v41  ;;  %v3145_v16 = vpop.f32.mrb[37].mxu0  ;;  %v3125_v17 = vpop.f32.mrb[50].mxu1 }
 0xad3   : > { %v3146_v18 = vadd.f32 %v3145_v16, %v3144_v9  ;;  %v3147_v53 = vpop.f32.mrb[38].mxu0  ;;  %v3126_v59 = vpop.f32.mrb[51].mxu1 }
 0xad4   : > { %v2738_v32 = vadd.f32 %v3124_v15, %v3016_v13  ;;  %v3127_v55 = vadd.f32 %v3126_v59, %v3125_v17  ;;  %v3148_v21 = vpop.f32.mrb[39].mxu0 }
 0xad5   : > { %v3149_v22 = vadd.f32 %v3148_v21, %v3147_v53 }
 0xad6   : > { %v2779_v23 = vadd.f32 %v3146_v18, %v2738_v32  ;;  %v2741_v11 = vadd.f32 %v3127_v55, %v3016_v13 }
 0xad8   : > { %v2785_v2 = vadd.f32 %v2779_v23, %v4613_v33  ;;  %v2782_v24 = vadd.f32 %v3149_v22, %v2741_v11 }
 0xada   : > { %2787 = vst [vmem:[%s489_s14] sm:$0xff] %v2785_v2  ;;  %v2786_v25 = vadd.f32 %v2782_v24, %v4616_v36 }
 0xadc   : > { %2788 = vst [vmem:[%s489_s14 + $0x8] sm:$0xff] %v2786_v25 }
 0xadd   : > { %3898 = shalt.err (!%p3895_p13)
}
 0xade   : > { %s3899_s13 = scalar_lea.hbm %s4653_s16, 256  ;;  %s3903_s14 = scalar_lea.hbm %s4740_s17, 512 }
 0xadf   : > { %p3900_p9 = scmp.ne.s32.totalorder %s4653_s16, %s3899_s13  ;;  %p3904_p4 = scmp.lt.u32.totalorder %s4653_s16, %s4740_s17 }
 0xae0   : > { %p3905_p8 = scmp.lt.u32.totalorder %s3903_s14, %s3899_s13  ;;  %p3907_p3 = scmp.lt.u32.totalorder %s3899_s13, %s4653_s16 }
 0xae1   : > { %p3901_p0 = pnand %p3900_p9, %p4208_p10 }
 0xae2   : > { %p3906_p6 = por %p3905_p8, %p3904_p4 }
 0xae3   : > { %p3902_p11 = pneg %p3901_p0 }
 0xae4   : > { %p3908_p5 = por %p3907_p3, %p3906_p6 }
 0xae6   : > { %p3909_p7 = pnand %p3908_p5, %p3902_p11 }
 0xae8   : > { %3912 = shalt.err (!%p3909_p7)
}
 0xae9   : > { %s3985_s29 = smov 128   ;;  %s3986_s28 = smov 8  }
 0xaea   : > { %3304 = dma.vmem_to_hbm [thread:$0]  (%p4208_p10), %s4648_s9, 256, %s4653_s16, %s2790_s11, %s3985_s29, %s3985_s29, %s3986_s28  }
 0xaeb PF: > { %s4741_s25 = sld [smem:[#allocation16_spill]]  ;;  %s4742_s3 = sld [smem:[#allocation17_spill]] }
 0xaec   : > { %p4744_p2 = scmp.ge.s32.totalorder %s3959_s24, 2 }
 0xaf1   : > { %s2818_s18 = sand.u32 1, %s4741_s25   ;;  %p4743_p12 = scmp.ne.s32.totalorder %s4742_s3, 0 }
 0xaf2   : > { %s2819_s13 = scalar_lea.sflag [#allocation4], %s2818_s18 }
 0xaf3   : > { %p3324_p1 = pnand %p4744_p2, %p4743_p12 }
 0xaf5   : > { %3942 = dma.done.wait (!%p3324_p1), %s2819_s13, 256  }
 0xaf6   : > { %3944 = vsyncadd (!%p3324_p1), %s2819_s13, 4294967040  ;;  %p27_p13 = scmp.ge.s32.totalorder %s4198_s30, 4   ;;  %s4745_s21 = smov %s3951_s22 }
 0xaf7   : > { %s4746_s22 = smov %s3955_s23  ;;  %s4747_s23 = smov %s4214_s20 }
 0xaf8   : > { %s4748_s24 = smov %s4198_s30  ;;  %29 = sbr.rel (!%p27_p13) target bundleno = 12 (0xc), region = 129 }
 0xaff   :  { %2824 = vsyncpa [#allocation3], 1 }
 0xb00   :  { %2826 = vsyncpa [#allocation3 + $0x1], 1 }
 0xb01   :  { %2827 = vsyncpa [#allocation6], 1 }
 0xb02   :  { %2828 = vsyncpa [#allocation9], 1 }
 0xb03   :  { %2829 = vsyncpa [#allocation4], 1 }
 0xb04   :  { %2831 = vsyncpa [#allocation4 + $0x1], 1 }

</bundles_post_ra>
